<compile_context>
chip_gen: v5e
topology: v5e:2x2
jax: 0.10.0
libtpu: 0.0.40
codegen_flags: <defaults>
</compile_context>

<pallas_src>
import functools

import jax
import jax.numpy as jnp
from jax.experimental import pallas as pl
from jax.experimental.pallas import tpu as pltpu


def _round_up(x, m):
    return (x + m - 1) // m * m


# ----------------------------------------------------------------------------
# Pallas kernels
# ----------------------------------------------------------------------------
def _matmul_bias_act_kernel(w_ref, p_ref, b_ref, o_ref, *, apply_relu):
    # w: (Cout, K) bf16, p: (K, TM) bf16, b: (Cout, 1) f32 -> o: (Cout, TM) f32
    acc = jnp.dot(w_ref[...], p_ref[...], preferred_element_type=jnp.float32)
    acc = acc + b_ref[...]                      # f32 epilogue, broadcast over lanes
    if apply_relu:
        acc = jnp.maximum(acc, 0.0)
    o_ref[...] = acc.astype(o_ref.dtype)


def matmul_bias_act(w, p, b, *, apply_relu, tm=512):
    """relu(w @ p + b); M = p.shape[1] sits on the lane axis, tiled over M."""
    cout, k = w.shape
    k2, m = p.shape
    assert k == k2
    tm = min(tm, _round_up(m, 128))
    grid_m = pl.cdiv(m, tm)
    kernel = functools.partial(_matmul_bias_act_kernel, apply_relu=apply_relu)
    bytes_accessed = (w.size * w.dtype.itemsize + p.size * p.dtype.itemsize
                      + b.size * b.dtype.itemsize + cout * m * 4)
    return pl.pallas_call(
        kernel,
        out_shape=jax.ShapeDtypeStruct((cout, m), jnp.float32),
        grid=(grid_m,),
        in_specs=[
            pl.BlockSpec((cout, k), lambda i: (0, 0)),   # weight: resident
            pl.BlockSpec((k, tm), lambda i: (0, i)),     # patches: tiled over M
            pl.BlockSpec((cout, 1), lambda i: (0, 0)),   # bias: resident
        ],
        out_specs=pl.BlockSpec((cout, tm), lambda i: (0, i)),
        compiler_params=pltpu.CompilerParams(
            dimension_semantics=("parallel",),           # megacore sharding on v7x
            vmem_limit_bytes=32 * 1024 * 1024,
        ),
        cost_estimate=pl.CostEstimate(
            flops=2 * cout * k * m,
            transcendentals=0,
            bytes_accessed=bytes_accessed,
        ),
    )(w, p, b)


def _tail_kernel(p_ref, w3_ref, b3_ref, w4_ref, b4_ref, w5_ref, b5_ref, o_ref):
    # Fused conv3 (acts as a linear on 400 features) + linear1 + linear2.
    # p: (400, N) bf16; weights bf16; biases (D, 1) f32; output (10, N) f32.
    h = jnp.dot(w3_ref[...], p_ref[...], preferred_element_type=jnp.float32)
    h = jnp.maximum(h + b3_ref[...], 0.0)                                  # (120, N)
    h = jnp.dot(w4_ref[...], h.astype(w4_ref.dtype),
                preferred_element_type=jnp.float32)
    h = jnp.maximum(h + b4_ref[...], 0.0)                                  # (84, N)
    h = jnp.dot(w5_ref[...], h.astype(w5_ref.dtype),
                preferred_element_type=jnp.float32)
    o_ref[...] = (h + b5_ref[...]).astype(o_ref.dtype)                     # (10, N)


def tail_fused(p, w3, b3, w4, b4, w5, b5):
    num_classes = w5.shape[0]
    n = p.shape[1]
    return pl.pallas_call(
        _tail_kernel,
        out_shape=jax.ShapeDtypeStruct((num_classes, n), jnp.float32),
        in_specs=[pl.BlockSpec(memory_space=pltpu.MemorySpace.VMEM)
                  for _ in range(7)],
        out_specs=pl.BlockSpec(memory_space=pltpu.MemorySpace.VMEM),
    )(p, w3, b3, w4, b4, w5, b5)


# ----------------------------------------------------------------------------
# XLA-side glue (im2col, pooling) around the Pallas matmuls
# ----------------------------------------------------------------------------
def _im2col_cnhw(x, kh, kw):
    # x: (C, N, H, W) -> (C*kh*kw, N*Ho*Wo); row ordering (c, i, j) matches
    # PyTorch weight.reshape(Cout, Cin*kh*kw). Only kh*kw slices regardless of C.
    c, n, h, w = x.shape
    ho, wo = h - kh + 1, w - kw + 1
    windows = [x[:, :, i:i + ho, j:j + wo] for i in range(kh) for j in range(kw)]
    patches = jnp.stack(windows, axis=1)            # (C, kh*kw, N, Ho, Wo)
    return patches.reshape(c * kh * kw, n * ho * wo)


def _avgpool2x2_cnhw(x):
    # AvgPool2d(kernel=2, stride=2) on CNHW via plain XLA reduce.
    # TODO(synk): per perf review, a standalone Pallas pool kernel is
    # launch/lane-overhead dominated, so this op is intentionally left to XLA.
    c, n, h, w = x.shape
    return x.reshape(c, n, h // 2, 2, w // 2, 2).mean(axis=(3, 5))


def conv2d_relu(x, w_mat, b, kh=5, kw=5):
    # x: (Cin, N, H, W); w_mat: (Cout, Cin*kh*kw) bf16; b: (Cout, 1) f32.
    cin, n, h, w = x.shape
    cout = w_mat.shape[0]
    ho, wo = h - kh + 1, w - kw + 1
    patches = _im2col_cnhw(x, kh, kw).astype(jnp.bfloat16)
    y = matmul_bias_act(w_mat, patches, b, apply_relu=True)   # (Cout, N*Ho*Wo)
    return y.reshape(cout, n, ho, wo)                         # already CNHW


# ----------------------------------------------------------------------------
# LeNet parameters + forward
# ----------------------------------------------------------------------------
def init_lenet_params(key, in_channels, num_classes):
    def conv_init(key, cout, cin, k):
        kw_, kb_ = jax.random.split(key)
        fan_in = cin * k * k
        bound = 1.0 / jnp.sqrt(fan_in)
        w = jax.random.uniform(kw_, (cout, cin, k, k), jnp.float32, -bound, bound)
        b = jax.random.uniform(kb_, (cout,), jnp.float32, -bound, bound)
        # Kernel-ready layout: (Cout, Cin*k*k) bf16 weight, (Cout, 1) f32 bias.
        return w.reshape(cout, cin * k * k).astype(jnp.bfloat16), b.reshape(cout, 1)

    def linear_init(key, dout, din):
        kw_, kb_ = jax.random.split(key)
        bound = 1.0 / jnp.sqrt(din)
        w = jax.random.uniform(kw_, (dout, din), jnp.float32, -bound, bound)
        b = jax.random.uniform(kb_, (dout,), jnp.float32, -bound, bound)
        return w.astype(jnp.bfloat16), b.reshape(dout, 1)

    k1, k2, k3, k4, k5 = jax.random.split(key, 5)
    return {
        "conv1": conv_init(k1, 6, in_channels, 5),
        "conv2": conv_init(k2, 16, 6, 5),
        "conv3": conv_init(k3, 120, 16, 5),
        "linear1": linear_init(k4, 84, 120),
        "linear2": linear_init(k5, num_classes, 84),
    }


def lenet_forward(params, x):
    # x: (N, in_channels, 32, 32), NCHW, float32
    n = x.shape[0]
    x = jnp.transpose(x, (1, 0, 2, 3))            # -> CNHW (Cin, N, 32, 32)
    x = conv2d_relu(x, *params["conv1"])          # (6, N, 28, 28)
    x = _avgpool2x2_cnhw(x)                       # (6, N, 14, 14)
    x = conv2d_relu(x, *params["conv2"])          # (16, N, 10, 10)
    x = _avgpool2x2_cnhw(x)                       # (16, N, 5, 5)
    # conv3 is a 5x5 conv on a 5x5 input -> exactly one patch per image.
    p3 = jnp.transpose(x, (0, 2, 3, 1)).reshape(16 * 5 * 5, n).astype(jnp.bfloat16)
    w3, b3 = params["conv3"]
    w4, b4 = params["linear1"]
    w5, b5 = params["linear2"]
    out = tail_fused(p3, w3, b3, w4, b4, w5, b5)  # (num_classes, N)
    return out.T                                  # (N, num_classes)


if __name__ == "__main__":
    in_channels = 1
    num_classes = 10
    batch = 2
    # LeNet requires 32x32 spatial input so conv3 reduces to 1x1.
    key = jax.random.PRNGKey(0)
    kx, kp = jax.random.split(key)
    x = jax.random.normal(kx, (batch, in_channels, 32, 32), jnp.float32)
    params = init_lenet_params(kp, in_channels, num_classes)

    fwd = jax.jit(lenet_forward)
    out = jax.block_until_ready(fwd(params, x))
    assert out.shape == (batch, num_classes), out.shape
    print("KERNEL_OK")
</pallas_src>

<mosaic_0001>
module attributes {stable_mosaic.version = 11 : i64} {
  func.func @_matmul_bias_act_kernel(%arg0: i32, %arg1: memref<6x25xbf16, #tpu.memory_space<vmem>>, %arg2: memref<25x512xbf16, #tpu.memory_space<vmem>>, %arg3: memref<6x1xf32, #tpu.memory_space<vmem>>, %arg4: memref<6x512xf32, #tpu.memory_space<vmem>>) attributes {dimension_semantics = [#tpu.dimension_semantics<parallel>], iteration_bounds = array<i64: 4>, scalar_prefetch = 0 : i64, scratch_operands = 0 : i64, tpu.core_type = #tpu.core_type<tc>, window_params = [{pipeline_mode = #tpu.pipeline_mode<synchronous>, transform_indices = @transform_0, window_bounds = array<i64: 6, 25>}, {transform_indices = @transform_1, window_bounds = array<i64: 25, 512>}, {pipeline_mode = #tpu.pipeline_mode<synchronous>, transform_indices = @transform_2, window_bounds = array<i64: 6, 1>}, {transform_indices = @transform_3, window_bounds = array<i64: 6, 512>}]} {
    %c0 = arith.constant 0 : index
    %c0_0 = arith.constant 0 : index
    %0 = vector.load %arg1[%c0, %c0_0] : memref<6x25xbf16, #tpu.memory_space<vmem>>, vector<6x25xbf16>
    %c0_1 = arith.constant 0 : index
    %c0_2 = arith.constant 0 : index
    %1 = vector.load %arg2[%c0_1, %c0_2] : memref<25x512xbf16, #tpu.memory_space<vmem>>, vector<25x512xbf16>
    %cst = arith.constant dense<0.000000e+00> : vector<6x512xf32>
    %2 = tpu.matmul %0, %1, %cst {dimension_numbers = #tpu.dot_dimension_numbers<[1], [0], [0], [1], [0, 0, 1, 1], [], []>} : vector<6x25xbf16>, vector<25x512xbf16>, vector<6x512xf32> -> vector<6x512xf32>
    %c0_3 = arith.constant 0 : index
    %c0_4 = arith.constant 0 : index
    %3 = vector.load %arg3[%c0_3, %c0_4] : memref<6x1xf32, #tpu.memory_space<vmem>>, vector<6x1xf32>
    %4 = vector.broadcast %3 : vector<6x1xf32> to vector<6x512xf32>
    %5 = arith.addf %2, %4 : vector<6x512xf32>
    %cst_5 = arith.constant 0.000000e+00 : f32
    %6 = vector.broadcast %cst_5 : f32 to vector<6x512xf32>
    %7 = arith.maximumf %5, %6 : vector<6x512xf32>
    %c0_6 = arith.constant 0 : index
    %c0_7 = arith.constant 0 : index
    %8 = vector.load %arg4[%c0_6, %c0_7] : memref<6x512xf32, #tpu.memory_space<vmem>>, vector<6x512xf32>
    tpu.vector_store %arg4[%c0_6, %c0_7], %7 {strides = array<i32>} : memref<6x512xf32, #tpu.memory_space<vmem>>, vector<6x512xf32>,
    return
  }
  func.func @transform_0(%arg0: i32) -> (i32, i32) {
    %c0_i32 = arith.constant 0 : i32
    %c0_i32_0 = arith.constant 0 : i32
    %c0_i32_1 = arith.constant 0 : i32
    return %c0_i32, %c0_i32_0 : i32, i32
  }
  func.func @transform_1(%arg0: i32) -> (i32, i32) {
    %c0_i32 = arith.constant 0 : i32
    %c0_i32_0 = arith.constant 0 : i32
    return %c0_i32, %arg0 : i32, i32
  }
  func.func @transform_2(%arg0: i32) -> (i32, i32) {
    %c0_i32 = arith.constant 0 : i32
    %c0_i32_0 = arith.constant 0 : i32
    %c0_i32_1 = arith.constant 0 : i32
    return %c0_i32, %c0_i32_0 : i32, i32
  }
  func.func @transform_3(%arg0: i32) -> (i32, i32) {
    %c0_i32 = arith.constant 0 : i32
    %c0_i32_0 = arith.constant 0 : i32
    return %c0_i32, %arg0 : i32, i32
  }
}

module attributes {stable_mosaic.version = 11 : i64} {
  func.func @_matmul_bias_act_kernel(%arg0: i32, %arg1: memref<16x150xbf16, #tpu.memory_space<vmem>>, %arg2: memref<150x256xbf16, #tpu.memory_space<vmem>>, %arg3: memref<16x1xf32, #tpu.memory_space<vmem>>, %arg4: memref<16x256xf32, #tpu.memory_space<vmem>>) attributes {dimension_semantics = [#tpu.dimension_semantics<parallel>], iteration_bounds = array<i64: 1>, scalar_prefetch = 0 : i64, scratch_operands = 0 : i64, tpu.core_type = #tpu.core_type<tc>, window_params = [{pipeline_mode = #tpu.pipeline_mode<synchronous>, transform_indices = @transform_0, window_bounds = array<i64: 16, 150>}, {transform_indices = @transform_1, window_bounds = array<i64: 150, 256>}, {pipeline_mode = #tpu.pipeline_mode<synchronous>, transform_indices = @transform_2, window_bounds = array<i64: 16, 1>}, {transform_indices = @transform_3, window_bounds = array<i64: 16, 256>}]} {
    %c0 = arith.constant 0 : index
    %c0_0 = arith.constant 0 : index
    %0 = vector.load %arg1[%c0, %c0_0] : memref<16x150xbf16, #tpu.memory_space<vmem>>, vector<16x150xbf16>
    %c0_1 = arith.constant 0 : index
    %c0_2 = arith.constant 0 : index
    %1 = vector.load %arg2[%c0_1, %c0_2] : memref<150x256xbf16, #tpu.memory_space<vmem>>, vector<150x256xbf16>
    %cst = arith.constant dense<0.000000e+00> : vector<16x256xf32>
    %2 = tpu.matmul %0, %1, %cst {dimension_numbers = #tpu.dot_dimension_numbers<[1], [0], [0], [1], [0, 0, 1, 1], [], []>} : vector<16x150xbf16>, vector<150x256xbf16>, vector<16x256xf32> -> vector<16x256xf32>
    %c0_3 = arith.constant 0 : index
    %c0_4 = arith.constant 0 : index
    %3 = vector.load %arg3[%c0_3, %c0_4] : memref<16x1xf32, #tpu.memory_space<vmem>>, vector<16x1xf32>
    %4 = vector.broadcast %3 : vector<16x1xf32> to vector<16x256xf32>
    %5 = arith.addf %2, %4 : vector<16x256xf32>
    %cst_5 = arith.constant 0.000000e+00 : f32
    %6 = vector.broadcast %cst_5 : f32 to vector<16x256xf32>
    %7 = arith.maximumf %5, %6 : vector<16x256xf32>
    %c0_6 = arith.constant 0 : index
    %c0_7 = arith.constant 0 : index
    %8 = vector.load %arg4[%c0_6, %c0_7] : memref<16x256xf32, #tpu.memory_space<vmem>>, vector<16x256xf32>
    tpu.vector_store %arg4[%c0_6, %c0_7], %7 {strides = array<i32>} : memref<16x256xf32, #tpu.memory_space<vmem>>, vector<16x256xf32>,
    return
  }
  func.func @transform_0(%arg0: i32) -> (i32, i32) {
    %c0_i32 = arith.constant 0 : i32
    %c0_i32_0 = arith.constant 0 : i32
    %c0_i32_1 = arith.constant 0 : i32
    return %c0_i32, %c0_i32_0 : i32, i32
  }
  func.func @transform_1(%arg0: i32) -> (i32, i32) {
    %c0_i32 = arith.constant 0 : i32
    %c0_i32_0 = arith.constant 0 : i32
    return %c0_i32, %arg0 : i32, i32
  }
  func.func @transform_2(%arg0: i32) -> (i32, i32) {
    %c0_i32 = arith.constant 0 : i32
    %c0_i32_0 = arith.constant 0 : i32
    %c0_i32_1 = arith.constant 0 : i32
    return %c0_i32, %c0_i32_0 : i32, i32
  }
  func.func @transform_3(%arg0: i32) -> (i32, i32) {
    %c0_i32 = arith.constant 0 : i32
    %c0_i32_0 = arith.constant 0 : i32
    return %c0_i32, %arg0 : i32, i32
  }
}

module attributes {stable_mosaic.version = 11 : i64} {
  func.func @_tail_kernel(%arg0: memref<400x2xbf16, #tpu.memory_space<vmem>>, %arg1: memref<120x400xbf16, #tpu.memory_space<vmem>>, %arg2: memref<120x1xf32, #tpu.memory_space<vmem>>, %arg3: memref<84x120xbf16, #tpu.memory_space<vmem>>, %arg4: memref<84x1xf32, #tpu.memory_space<vmem>>, %arg5: memref<10x84xbf16, #tpu.memory_space<vmem>>, %arg6: memref<10x1xf32, #tpu.memory_space<vmem>>, %arg7: memref<10x2xf32, #tpu.memory_space<vmem>>) attributes {dimension_semantics = [], scalar_prefetch = 0 : i64, scratch_operands = 0 : i64, tpu.core_type = #tpu.core_type<tc>} {
    %c0 = arith.constant 0 : index
    %c0_0 = arith.constant 0 : index
    %0 = vector.load %arg1[%c0, %c0_0] : memref<120x400xbf16, #tpu.memory_space<vmem>>, vector<120x400xbf16>
    %c0_1 = arith.constant 0 : index
    %c0_2 = arith.constant 0 : index
    %1 = vector.load %arg0[%c0_1, %c0_2] : memref<400x2xbf16, #tpu.memory_space<vmem>>, vector<400x2xbf16>
    %cst = arith.constant dense<0.000000e+00> : vector<120x2xf32>
    %2 = tpu.matmul %0, %1, %cst {dimension_numbers = #tpu.dot_dimension_numbers<[1], [0], [0], [1], [0, 0, 1, 1], [], []>} : vector<120x400xbf16>, vector<400x2xbf16>, vector<120x2xf32> -> vector<120x2xf32>
    %c0_3 = arith.constant 0 : index
    %c0_4 = arith.constant 0 : index
    %3 = vector.load %arg2[%c0_3, %c0_4] : memref<120x1xf32, #tpu.memory_space<vmem>>, vector<120x1xf32>
    %4 = vector.broadcast %3 : vector<120x1xf32> to vector<120x2xf32>
    %5 = arith.addf %2, %4 : vector<120x2xf32>
    %cst_5 = arith.constant 0.000000e+00 : f32
    %6 = vector.broadcast %cst_5 : f32 to vector<120x2xf32>
    %7 = arith.maximumf %5, %6 : vector<120x2xf32>
    %c0_6 = arith.constant 0 : index
    %c0_7 = arith.constant 0 : index
    %8 = vector.load %arg3[%c0_6, %c0_7] : memref<84x120xbf16, #tpu.memory_space<vmem>>, vector<84x120xbf16>
    %9 = arith.truncf %7 : vector<120x2xf32> to vector<120x2xbf16>
    %cst_8 = arith.constant dense<0.000000e+00> : vector<84x2xf32>
    %10 = tpu.matmul %8, %9, %cst_8 {dimension_numbers = #tpu.dot_dimension_numbers<[1], [0], [0], [1], [0, 0, 1, 1], [], []>} : vector<84x120xbf16>, vector<120x2xbf16>, vector<84x2xf32> -> vector<84x2xf32>
    %c0_9 = arith.constant 0 : index
    %c0_10 = arith.constant 0 : index
    %11 = vector.load %arg4[%c0_9, %c0_10] : memref<84x1xf32, #tpu.memory_space<vmem>>, vector<84x1xf32>
    %12 = vector.broadcast %11 : vector<84x1xf32> to vector<84x2xf32>
    %13 = arith.addf %10, %12 : vector<84x2xf32>
    %cst_11 = arith.constant 0.000000e+00 : f32
    %14 = vector.broadcast %cst_11 : f32 to vector<84x2xf32>
    %15 = arith.maximumf %13, %14 : vector<84x2xf32>
    %c0_12 = arith.constant 0 : index
    %c0_13 = arith.constant 0 : index
    %16 = vector.load %arg5[%c0_12, %c0_13] : memref<10x84xbf16, #tpu.memory_space<vmem>>, vector<10x84xbf16>
    %17 = arith.truncf %15 : vector<84x2xf32> to vector<84x2xbf16>
    %cst_14 = arith.constant dense<0.000000e+00> : vector<10x2xf32>
    %18 = tpu.matmul %16, %17, %cst_14 {dimension_numbers = #tpu.dot_dimension_numbers<[1], [0], [0], [1], [0, 0, 1, 1], [], []>} : vector<10x84xbf16>, vector<84x2xbf16>, vector<10x2xf32> -> vector<10x2xf32>
    %c0_15 = arith.constant 0 : index
    %c0_16 = arith.constant 0 : index
    %19 = vector.load %arg6[%c0_15, %c0_16] : memref<10x1xf32, #tpu.memory_space<vmem>>, vector<10x1xf32>
    %20 = vector.broadcast %19 : vector<10x1xf32> to vector<10x2xf32>
    %21 = arith.addf %18, %20 : vector<10x2xf32>
    %c0_17 = arith.constant 0 : index
    %c0_18 = arith.constant 0 : index
    %22 = vector.load %arg7[%c0_17, %c0_18] : memref<10x2xf32, #tpu.memory_space<vmem>>, vector<10x2xf32>
    tpu.vector_store %arg7[%c0_17, %c0_18], %21 {strides = array<i32>} : memref<10x2xf32, #tpu.memory_space<vmem>>, vector<10x2xf32>,
    return
  }
}

</mosaic_0001>

<bundles_post_ra>
// kernel: lenet_forward.3
= control target key start
LH: loop header
LB: loop body
LE: loop exit
PB: predicated region body
PF: predicated region fallthrough
CT: control target
= control target key end

     0   :  { %8 = vsyncpa [#allocation3], 0  ;;  %s1897_s12 = smov 0   ;;  %s1899_s13 = smov 0   ;;  %s2510_s0 = inlined_call_operand.hbm [shape: bf16[6,25], index: 0, kind: input, shape index: {}]   ;;  %s2511_s1 = inlined_call_operand.vmem [shape: bf16[25,1568], index: 1, kind: input, shape index: {}]   ;;  %s2512_s2 = inlined_call_operand.vmem [shape: f32[6,1], index: 2, kind: input, shape index: {}]   ;;  %s2513_s3 = inlined_call_operand.vmem [shape: f32[6,1568], index: 3, kind: output, shape index: {}]  }
   0x1   :  { %s1901_s14 = smov 0  }
   0x2 LB: > { %s1913_s15 = sadd.s32 4294967295, %s1740_s14   ;;  %s1916_s16 = sadd.s32 1, %s1740_s14   ;;  %s1740_s14 = sphi %s1901_s14, %s2544_s14   ;;  %s1736_s13 = sphi %s1899_s13, %s2543_s13   ;;  %s1732_s12 = sphi %s1897_s12, %s2542_s12  }
   0x3   : > { %s39_s17 = ssub.s32 %s1740_s14, %s1916_s16  ;;  %s42_s18 = sadd.s32 1, %s1736_s13 }
   0x4   : > { %p40_p0 = scmp.eq.s32.totalorder %s39_s17, 0  ;;  %p49_p1 = scmp.ne.s32.totalorder %s1736_s13, %s1732_s12 }
   0x5   : > { %p50_p2 = scmp.eq.s32.totalorder %s1740_s14, 0  ;;  %p100_p3 = scmp.eq.s32.totalorder %s1913_s15, 3 }
   0x6   : > { %s1926_s19 = scalar_select %p40_p0, %s1736_s13, %s42_s18  }
   0x7   : > { %p1928_p4 = por %p50_p2, %p49_p1  ;;  %p1932_p5 = por %p100_p3, %p49_p1 }
   0x8   : > { %p1137_p6 = scmp.ge.s32.totalorder %s1740_s14, 1  ;;  %p113_p7 = scmp.lt.s32.totalorder %s1740_s14, 5 }
   0x9   : > { %p1266_p8 = scmp.eq.s32.totalorder %s1913_s15, 0  ;;  %s125_s25 = sshll.u32 %s2510_s0, 4  ;;  %s126_s25 = int_to_ptr.hbm [resolvable:$true] %s125_s25 }
   0xa   : > { %p1939_p9 = pnand %p1137_p6, %p113_p7  ;;  %s1870_s26 = smov [#allocation2]  }
   0xb   : > { %s127_s27 = sshll.u32 %s1870_s26, 4  ;;  %p1139_p12 = scmp.ge.s32.totalorder %s1740_s14, 4  ;;  %s128_s27 = int_to_ptr.vmem [resolvable:$true] %s127_s27 }
   0xc   : > { %p1262_p10 = pneg %p1939_p9 }
   0xd   : > { %137 = sbr.rel (%p1139_p12) target bundleno = 141 (0x8d), region = 24 }
   0xe   : > { %p1263_p11 = pnand %p1266_p8, %p1262_p10 }
  0x10   : > { %1265 = dma.hbm_to_vmem [thread:$0]  (!%p1263_p11), %s126_s25, 64, %s128_s27, [#allocation3]  }
  0x12   : > { %140 = sbr.rel (!%p1928_p4) target bundleno = 141 (0x8d), region = 28  ;;  %s142_s28 = sand.u32 (%p1928_p4), 1, %s1736_s13  }
  0x13   : > { %s1141_s29 = sshll.u32 (%p1928_p4), %s1740_s14, 2  ;;  %s1140_s30 = sshll.u32 (%p1928_p4), %s142_s28, 6 }
  0x14   : > { %s146_s4 = ssub.s32 (%p1928_p4), 13, %s1141_s29  ;;  %s1240_s5 = sshll.u32 (%p1928_p4), %s1740_s14, 4 }
  0x15   : > { %p147_p13 = scmp.lt.s32.totalorder (%p1928_p4), %s146_s4, 4  ;;  %s1959_s8 = scalar_lea.vmem (%p1928_p4), %s2511_s1, %s1240_s5  }
  0x16   : > { %s1963_s11 = scalar_lea.vmem (%p1928_p4), [#allocation4], %s1140_s30  }
  0x17   : > { %s2546_s4 = smov (!%p147_p13, %s146_s4), 4 }
  0x18   : > { %s1142_s9 = sshll.u32 %s2546_s4, 4  ;;  %s1961_s10 = sshll.u32 %s2546_s4, 2 }
  0x19   : > { %p1146_p0 = scmp.eq.s32.totalorder %s1142_s9, 0 }
  0x1a   : > { %p157_p1 = scmp.lt.u32.totalorder (!%p1146_p0), %s1961_s10, 8 }
  0x1b   : > { %156 = sbr.rel (%p1146_p0) target bundleno = 141 (0x8d), region = 32 }
  0x20   : > { %160 = sbr.rel (%p157_p1) target bundleno = 129 (0x81), region = 36  ;;  %s1967_s17 = sand.u32 (!%p157_p1), 7, %s1961_s10  }
  0x21   : > { %p183_p2 = scmp.eq.s32.totalorder (!%p157_p1), %s1967_s17, 0  ;;  %p1147_p3 = scmp.ne.s32.totalorder (!%p157_p1), %s1967_s17, 0 }
  0x25   : > { %186 = sbr.rel (%p1147_p3) target bundleno = 79 (0x4f), region = 51  ;;  %s187_s14 = sshrl.u32 (!%p1147_p3), %s1961_s10, 3 }
  0x26   : > { %s1974_s18 = sshrl.u32 (!%p1147_p3), %s187_s14, 3 }
  0x27   : > { %p1148_p4 = scmp.le.s32.totalorder (!%p1147_p3), %s1974_s18, 0 }
  0x2a   : > { %999 = sbr.rel (%p1148_p4) target bundleno = 62 (0x3e), region = 234  ;;  %s2517_s20 = smov (!%p1148_p4), %s1963_s11 }
  0x2b   : > { %s2518_s23 = smov (!%p1148_p4), %s1959_s8  ;;  %s1983_s24 = smov (!%p1148_p4), 0  }
  0x2c   : > { %s1985_s25 = smov (!%p1148_p4), 0  }
  0x2f LB: >> { %v198_v0 = vld [vmem:[%s1748_s23] sm:$0xff]  ;;  %v200_v1 = vld [vmem:[%s1748_s23 + $0x8] sm:$0xff]  ;;  %v214_v2 = vld [vmem:[%s1748_s23 + $0x34] sm:$0xff]  ;;  %s262_s26 = sadd.s32 1, %s1752_s24  ;;  %s192_s25 = sadd.s32 1, %s1756_s25   ;;  %s1756_s25 = sphi %s1985_s25, %s192_s25   ;;  %s1752_s24 = sphi %s1983_s24, %s2521_s24   ;;  %s1748_s23 = sphi %s2518_s23, %s2520_s23   ;;  %s1744_s20 = sphi %s2517_s20, %s2519_s20  }
  0x30   : >> { %199 = vst [vmem:[%s1744_s20] sm:$0xff] %v198_v0  ;;  %v216_v3 = vld [vmem:[%s1748_s23 + $0x3c] sm:$0xff]  ;;  %v230_v4 = vld [vmem:[%s1748_s23 + $0x68] sm:$0xff]  ;;  %v232_v5 = vld [vmem:[%s1748_s23 + $0x70] sm:$0xff]  ;;  %p263_p6 = scmp.ge.s32.totalorder %s262_s26, %s1974_s18  ;;  %p191_p7 = scmp.ge.s32.totalorder %s192_s25, %s1974_s18 }
  0x31   : >> { %201 = vst [vmem:[%s1744_s20 + $0x8] sm:$0xff] %v200_v1  ;;  %v246_v6 = vld [vmem:[%s1748_s23 + $0x9c] sm:$0xff]  ;;  %v248_v7 = vld [vmem:[%s1748_s23 + $0xa4] sm:$0xff]  ;;  %v250_v8 = vld [vmem:[%s1748_s23 + $0xac] sm:$0xff] }
  0x32   : >> { %215 = vst [vmem:[%s1744_s20 + $0x10] sm:$0xff] %v214_v2  ;;  %s2548_s26 = smov (%p263_p6, %s262_s26), 0  ;;  %v252_v9 = vld [vmem:[%s1748_s23 + $0xb4] sm:$0xff]  ;;  %v254_v10 = vld [vmem:[%s1748_s23 + $0xbc] sm:$0xff]  ;;  %v256_v11 = vld [vmem:[%s1748_s23 + $0xc4] sm:$0xff] }
  0x33   : >> { %217 = vst [vmem:[%s1744_s20 + $0x18] sm:$0xff] %v216_v3  ;;  %s1149_s27 = sshll.u32 %s2548_s26, 6  ;;  %v258_v12 = vld [vmem:[%s1748_s23 + $0xcc] sm:$0xff]  ;;  %v260_v13 = vld [vmem:[%s1748_s23 + $0xd4] sm:$0xff]  ;;  %s2521_s24 = smov %s2548_s26 }
  0x34   : >> { %231 = vst [vmem:[%s1744_s20 + $0x20] sm:$0xff] %v230_v4  ;;  %s267_s28 = scalar_lea.vmem %s1959_s8, %s1149_s27   ;;  %s268_s29 = scalar_lea.vmem %s1963_s11, %s1149_s27 [#allocation4]  }
  0x35   : >> { %233 = vst [vmem:[%s1744_s20 + $0x28] sm:$0xff] %v232_v5  ;;  %s2520_s23 = smov %s267_s28 }
  0x36   : >> { %247 = vst [vmem:[%s1744_s20 + $0x30] sm:$0xff] %v246_v6 }
  0x37   : >> { %249 = vst [vmem:[%s1744_s20 + $0x38] sm:$0xff] %v248_v7 }
  0x38   : >> { %251 = vst [vmem:[%s1744_s20 + $0x40] sm:$0xff] %v250_v8 }
  0x39   : >> { %253 = vst [vmem:[%s1744_s20 + $0x48] sm:$0xff] %v252_v9  ;;  %194 = sbr.rel (!%p191_p7) target bundleno = 47 (0x2f), region = 240 }
  0x3a   : >> { %255 = vst [vmem:[%s1744_s20 + $0x50] sm:$0xff] %v254_v10 }
  0x3b   : >> { %257 = vst [vmem:[%s1744_s20 + $0x58] sm:$0xff] %v256_v11 }
  0x3c   : >> { %259 = vst [vmem:[%s1744_s20 + $0x60] sm:$0xff] %v258_v12 }
  0x3d   : >> { %261 = vst [vmem:[%s1744_s20 + $0x68] sm:$0xff] %v260_v13  ;;  %s2519_s20 = smov %s268_s29 }
  0x3e PF: > { %s2040_s30 = sand.u32 7, %s187_s14   ;;  %s1241_s4 = sshll.u32 %s1974_s18, 6 }
  0x3f   : > { %s2044_s5 = scalar_lea.vmem %s1959_s8, %s1241_s4   ;;  %s2047_s6 = scalar_lea.vmem %s1963_s11, %s1241_s4 [#allocation4]  }
  0x40   : > { %p1154_p10 = scmp.le.s32.totalorder %s2040_s30, 0 }
  0x41   : > { %s2522_s7 = smov (!%p1154_p10), %s2047_s6  ;;  %s2523_s9 = smov (!%p1154_p10), %s2044_s5 }
  0x42   : > { %1013 = sbr.rel (%p1154_p10) target bundleno = 79 (0x4f), region = 245  ;;  %s2056_s20 = smov (!%p1154_p10), 0  }
  0x43   : > { %s1770_s23 = smov (!%p1154_p10), 0  }
  0x47 LB: >> { %v285_v14 = vld [vmem:[%s1764_s9] sm:$0xff]  ;;  %v287_v15 = vld [vmem:[%s1764_s9 + $0x34] sm:$0xff]  ;;  %v289_v16 = vld [vmem:[%s1764_s9 + $0x68] sm:$0xff]  ;;  %s293_s14 = sadd.s32 1, %s1768_s20  ;;  %s279_s23 = sadd.s32 1, %s1772_s23   ;;  %s1772_s23 = sphi %s1770_s23, %s279_s23   ;;  %s1768_s20 = sphi %s2056_s20, %s2524_s20   ;;  %s1764_s9 = sphi %s2523_s9, %s298_s9   ;;  %s1760_s7 = sphi %s2522_s7, %s299_s7  }
  0x48   : >> { %286 = vst [vmem:[%s1760_s7] sm:$0xff] %v285_v14  ;;  %v291_v17 = vld [vmem:[%s1764_s9 + $0x9c] sm:$0xff]  ;;  %p294_p11 = scmp.ge.s32.totalorder %s293_s14, %s2040_s30  ;;  %p278_p12 = scmp.ge.s32.totalorder %s279_s23, %s2040_s30 }
  0x49   : >> { %288 = vst [vmem:[%s1760_s7 + $0x10] sm:$0xff] %v287_v15 }
  0x4a   : >> { %290 = vst [vmem:[%s1760_s7 + $0x20] sm:$0xff] %v289_v16  ;;  %s2550_s14 = smov (%p294_p11, %s293_s14), 0  ;;  %281 = sbr.rel (!%p278_p12) target bundleno = 71 (0x47), region = 251 }
  0x4b   : >> { %292 = vst [vmem:[%s1760_s7 + $0x30] sm:$0xff] %v291_v17  ;;  %s1155_s18 = sshll.u32 %s2550_s14, 3  ;;  %s2524_s20 = smov %s2550_s14 }
  0x4c   : >> { %s298_s9 = scalar_lea.vmem %s2044_s5, %s1155_s18   ;;  %s299_s7 = scalar_lea.vmem %s2047_s6, %s1155_s18 [#allocation4]  }
  0x4f PF: > { %302 = sbr.rel (%p183_p2) target bundleno = 129 (0x81), region = 69  ;;  %s304_s24 = ssub.s32 (!%p183_p2), %s1961_s10, %s1967_s17 }
  0x50   : > { %s308_s25 = sshrl.u32 (!%p183_p2), %s1961_s10, 3  ;;  %s2077_s26 = scalar_lea.vmem (!%p183_p2), %s1959_s8, %s304_s24 }
  0x51   : > { %s2080_s27 = scalar_lea.vmem (!%p183_p2), %s1963_s11, %s304_s24 [#allocation4]  ;;  %s2084_s28 = sshrl.u32 (!%p183_p2), %s308_s25, 3 }
  0x52   : > { %p1157_p13 = scmp.le.s32.totalorder (!%p183_p2), %s2084_s28, 0 }
  0x54   : > { %1027 = sbr.rel (%p1157_p13) target bundleno = 104 (0x68), region = 256  ;;  %s2525_s29 = smov (!%p1157_p13), %s1963_s11 }
  0x55   : > { %s2526_s30 = smov (!%p1157_p13), %s1959_s8  ;;  %s2093_s4 = smov (!%p1157_p13), 0  }
  0x56   : > { %s2095_s5 = smov (!%p1157_p13), 0  }
  0x59 LB: >> { %v319_v18 = vld [vmem:[%s1780_s30] sm:$0xff]  ;;  %v321_v19 = vld [vmem:[%s1780_s30 + $0x8] sm:$0xff]  ;;  %v335_v20 = vld [vmem:[%s1780_s30 + $0x34] sm:$0xff]  ;;  %s383_s6 = sadd.s32 1, %s1784_s4  ;;  %s313_s5 = sadd.s32 1, %s1788_s5   ;;  %s1788_s5 = sphi %s2095_s5, %s313_s5   ;;  %s1784_s4 = sphi %s2093_s4, %s2529_s4   ;;  %s1780_s30 = sphi %s2526_s30, %s2528_s30   ;;  %s1776_s29 = sphi %s2525_s29, %s2527_s29  }
  0x5a   : >> { %320 = vst [vmem:[%s1776_s29] sm:$0xff] %v319_v18  ;;  %v337_v21 = vld [vmem:[%s1780_s30 + $0x3c] sm:$0xff]  ;;  %v351_v22 = vld [vmem:[%s1780_s30 + $0x68] sm:$0xff]  ;;  %v353_v23 = vld [vmem:[%s1780_s30 + $0x70] sm:$0xff]  ;;  %p384_p0 = scmp.ge.s32.totalorder %s383_s6, %s2084_s28  ;;  %p312_p1 = scmp.ge.s32.totalorder %s313_s5, %s2084_s28 }
  0x5b   : >> { %322 = vst [vmem:[%s1776_s29 + $0x8] sm:$0xff] %v321_v19  ;;  %v367_v24 = vld [vmem:[%s1780_s30 + $0x9c] sm:$0xff]  ;;  %v369_v25 = vld [vmem:[%s1780_s30 + $0xa4] sm:$0xff]  ;;  %v371_v26 = vld [vmem:[%s1780_s30 + $0xac] sm:$0xff] }
  0x5c   : >> { %336 = vst [vmem:[%s1776_s29 + $0x10] sm:$0xff] %v335_v20  ;;  %s2552_s6 = smov (%p384_p0, %s383_s6), 0  ;;  %v373_v27 = vld [vmem:[%s1780_s30 + $0xb4] sm:$0xff]  ;;  %v375_v28 = vld [vmem:[%s1780_s30 + $0xbc] sm:$0xff]  ;;  %v377_v29 = vld [vmem:[%s1780_s30 + $0xc4] sm:$0xff] }
  0x5d   : >> { %338 = vst [vmem:[%s1776_s29 + $0x18] sm:$0xff] %v337_v21  ;;  %s1158_s7 = sshll.u32 %s2552_s6, 6  ;;  %v379_v30 = vld [vmem:[%s1780_s30 + $0xcc] sm:$0xff]  ;;  %v381_v31 = vld [vmem:[%s1780_s30 + $0xd4] sm:$0xff]  ;;  %s2529_s4 = smov %s2552_s6 }
  0x5e   : >> { %352 = vst [vmem:[%s1776_s29 + $0x20] sm:$0xff] %v351_v22  ;;  %s388_s9 = scalar_lea.vmem %s1959_s8, %s1158_s7   ;;  %s389_s20 = scalar_lea.vmem %s1963_s11, %s1158_s7 [#allocation4]  }
  0x5f   : >> { %354 = vst [vmem:[%s1776_s29 + $0x28] sm:$0xff] %v353_v23  ;;  %s2528_s30 = smov %s388_s9 }
  0x60   : >> { %368 = vst [vmem:[%s1776_s29 + $0x30] sm:$0xff] %v367_v24 }
  0x61   : >> { %370 = vst [vmem:[%s1776_s29 + $0x38] sm:$0xff] %v369_v25 }
  0x62   : >> { %372 = vst [vmem:[%s1776_s29 + $0x40] sm:$0xff] %v371_v26 }
  0x63   : >> { %374 = vst [vmem:[%s1776_s29 + $0x48] sm:$0xff] %v373_v27  ;;  %315 = sbr.rel (!%p312_p1) target bundleno = 89 (0x59), region = 262 }
  0x64   : >> { %376 = vst [vmem:[%s1776_s29 + $0x50] sm:$0xff] %v375_v28 }
  0x65   : >> { %378 = vst [vmem:[%s1776_s29 + $0x58] sm:$0xff] %v377_v29 }
  0x66   : >> { %380 = vst [vmem:[%s1776_s29 + $0x60] sm:$0xff] %v379_v30 }
  0x67   : >> { %382 = vst [vmem:[%s1776_s29 + $0x68] sm:$0xff] %v381_v31  ;;  %s2527_s29 = smov %s389_s20 }
  0x68 PF: > { %s2150_s23 = sand.u32 7, %s308_s25   ;;  %s1243_s14 = sshll.u32 %s2084_s28, 6 }
  0x69   : > { %s2154_s18 = scalar_lea.vmem %s1959_s8, %s1243_s14   ;;  %s2157_s24 = scalar_lea.vmem %s1963_s11, %s1243_s14 [#allocation4]  }
  0x6a   : > { %p1163_p2 = scmp.le.s32.totalorder %s2150_s23, 0 }
  0x6b   : > { %s2530_s5 = smov (!%p1163_p2), %s2157_s24  ;;  %s2531_s29 = smov (!%p1163_p2), %s2154_s18 }
  0x6c   : > { %1041 = sbr.rel (%p1163_p2) target bundleno = 121 (0x79), region = 267  ;;  %s1798_s30 = smov (!%p1163_p2), 0  }
  0x6d   : > { %s1802_s4 = smov (!%p1163_p2), 0  }
  0x71 LB: >> { %v406_v32 = vld [vmem:[%s1796_s29] sm:$0xff]  ;;  %v408_v33 = vld [vmem:[%s1796_s29 + $0x34] sm:$0xff]  ;;  %v410_v34 = vld [vmem:[%s1796_s29 + $0x68] sm:$0xff]  ;;  %s414_s25 = sadd.s32 1, %s1800_s30  ;;  %s400_s4 = sadd.s32 1, %s1804_s4   ;;  %s1804_s4 = sphi %s1802_s4, %s400_s4   ;;  %s1800_s30 = sphi %s1798_s30, %s1799_s30   ;;  %s1796_s29 = sphi %s2531_s29, %s419_s29   ;;  %s1792_s5 = sphi %s2530_s5, %s420_s5  }
  0x72   : >> { %407 = vst [vmem:[%s1792_s5] sm:$0xff] %v406_v32  ;;  %v412_v35 = vld [vmem:[%s1796_s29 + $0x9c] sm:$0xff]  ;;  %p415_p3 = scmp.ge.s32.totalorder %s414_s25, %s2150_s23  ;;  %p399_p4 = scmp.ge.s32.totalorder %s400_s4, %s2150_s23 }
  0x73   : >> { %409 = vst [vmem:[%s1792_s5 + $0x10] sm:$0xff] %v408_v33 }
  0x74   : >> { %411 = vst [vmem:[%s1792_s5 + $0x20] sm:$0xff] %v410_v34  ;;  %s2554_s25 = smov (%p415_p3, %s414_s25), 0  ;;  %402 = sbr.rel (!%p399_p4) target bundleno = 113 (0x71), region = 273 }
  0x75   : >> { %413 = vst [vmem:[%s1792_s5 + $0x30] sm:$0xff] %v412_v35  ;;  %s1164_s28 = sshll.u32 %s2554_s25, 3  ;;  %s1799_s30 = smov %s2554_s25  }
  0x76   : >> { %s419_s29 = scalar_lea.vmem %s2154_s18, %s1164_s28   ;;  %s420_s5 = scalar_lea.vmem %s2157_s24, %s1164_s28 [#allocation4]  }
  0x79 PF: > { %s1871_s6 = smov 1  }
  0x7a   : > { %s421_s7 = sshll.u32 %s1871_s6, %s1967_s17 }
  0x7b   : > { %s1166_s9 = sadd.s32 4294967295, %s421_s7 }
  0x7c   : > { %v431_v36 = vld [vmem:[%s2077_s26] sm:%s1166_s9]  ;;  %v433_v37 = vld [vmem:[%s2077_s26 + $0x34] sm:%s1166_s9] }
  0x7d   : > { %432 = vst [vmem:[%s2080_s27] sm:%s1166_s9] %v431_v36  ;;  %v435_v38 = vld [vmem:[%s2077_s26 + $0x68] sm:%s1166_s9] }
  0x7e   : > { %434 = vst [vmem:[%s2080_s27 + $0x10] sm:%s1166_s9] %v433_v37  ;;  %v437_v39 = vld [vmem:[%s2077_s26 + $0x9c] sm:%s1166_s9] }
  0x7f   : > { %436 = vst [vmem:[%s2080_s27 + $0x20] sm:%s1166_s9] %v435_v38 }
  0x80   : > { %438 = vst [vmem:[%s2080_s27 + $0x30] sm:%s1166_s9] %v437_v39 }
  0x81 PF: > { %p1167_p6 = scmp.ge.u32.totalorder %s1961_s10, 8 }
  0x82   : > { %s1872_s20 = smov (!%p1167_p6), 1  }
  0x83   : > { %163 = sbr.rel (%p1167_p6) target bundleno = 141 (0x8d), region = 40  ;;  %s164_s17 = sshll.u32 (!%p1167_p6), %s1872_s20, %s1961_s10 }
  0x84   : > { %s1168_s23 = sadd.s32 (!%p1167_p6), 4294967295, %s164_s17 }
  0x88   : > { %v174_v40 = vld [vmem:[%s1959_s8] sm:%s1168_s23]  ;;  %v176_v41 = vld [vmem:[%s1959_s8 + $0x34] sm:%s1168_s23] }
  0x89   : > { %175 = vst [vmem:[%s1963_s11] sm:%s1168_s23] %v174_v40  ;;  %v178_v42 = vld [vmem:[%s1959_s8 + $0x68] sm:%s1168_s23] }
  0x8a   : > { %177 = vst [vmem:[%s1963_s11 + $0x10] sm:%s1168_s23] %v176_v41  ;;  %v180_v43 = vld [vmem:[%s1959_s8 + $0x9c] sm:%s1168_s23] }
  0x8b   : > { %179 = vst [vmem:[%s1963_s11 + $0x20] sm:%s1168_s23] %v178_v42 }
  0x8c   : > { %181 = vst [vmem:[%s1963_s11 + $0x30] sm:%s1168_s23] %v180_v43 }
  0x8d PF: > { %445 = sbr.rel (%p1939_p9) target bundleno = 452 (0x1c4), region = 94 }
  0x92   : > { %1727 = dma.done.wait (%p1266_p8), [#allocation3], 64  }
  0x93   : > { %1729 = vsyncadd (%p1266_p8), [#allocation3], 4294967232  ;;  %s453_s10 = sand.u32 1, %s1732_s12   ;;  %vm541_vm0 = vcmask 1043456   ;;  %v1873_v44 = vmov 0   ;;  %vm542_vm1 = vcmask 1044480  }
  0x94   : > { %s1171_s8 = sshll.u32 %s453_s10, 6  ;;  %1555 = vset.pattern.permute.xlu0 %v1873_v44  ;;  %v1874_v45 = vmov 65535   ;;  %v495_v9 = vld [vmem:[%s2512_s2] sm:$0x3f]  ;;  %vm537_vm2 = vcmask 203776   ;;  %s1172_s27 = sshll.u32 %s453_s10, 5 }
  0x95   : > { %v543_v46 = vsel %vm541_vm0, 4294967295, %v1874_v45  ;;  %s455_s22 = scalar_lea.vmem [#allocation4], %s1171_s8  ;;  %498 = vperm.xlu0 %1555, %v495_v9   ;;  %v486_v13 = vld [vmem:[#allocation2] sm:$0x7]  ;;  %s2209_s14 = scalar_lea.vmem [#allocation5], %s1172_s27  }
  0x96   : > { %v544_v47 = vsel %vm542_vm1, %v543_v46, 0  ;;  %v1191_v48 = vld [vmem:[%s455_s22 + $0x20] sm:$0xf]  ;;  %v1251_v49 = vld [vmem:[%s455_s22 + $0x2c] sm:$0x10]  ;;  %s1210_s12 = sshll.u32 (%p1932_p5), %s1913_s15, 2 }
  0x97   : > { %v1249_v50 = vld [vmem:[%s455_s22 + $0x24] sm:$0xf]  ;;  %v1192_v51 = vor.u32 %v1251_v49, %v1191_v48  ;;  %v1193_v52 = vld [vmem:[%s455_s22 + $0x30] sm:$0x10]  ;;  %v1199_v53 = vld [vmem:[%s455_s22 + $0x28] sm:$0xf] }
  0x98   : > { %v1252_v54 = vld [vmem:[%s455_s22 + $0x34] sm:$0x10]  ;;  %v1196_v55 = vor.u32 %v1249_v50, %v1193_v52  ;;  %v1250_v57 = vld [vmem:[%s455_s22 + $0x2c] sm:$0xf]  ;;  %v1201_v58 = vld [vmem:[%s455_s22 + $0x38] sm:$0x10] }
  0x99   : > { %v1200_v56 = vor.u32 %v1252_v54, %v1199_v53  ;;  %v1175_v59 = vld [vmem:[%s455_s22] sm:$0xf]  ;;  %v546_v60 = vand.u32 %v1192_v51, %v544_v47  ;;  %v1204_v61 = vor.u32 %v1250_v57, %v1201_v58  ;;  %v1247_v62 = vld [vmem:[%s455_s22 + $0xc] sm:$0xf0]  ;;  %v1245_v63 = vld [vmem:[%s455_s22 + $0x4] sm:$0xf] }
  0x9a   : > { %v1177_v0 = vld [vmem:[%s455_s22 + $0x10] sm:$0xf0]  ;;  %v549_v1 = vand.u32 %v1196_v55, %v544_v47  ;;  %v1183_v3 = vld [vmem:[%s455_s22 + $0x8] sm:$0xf]  ;;  %v1248_v4 = vld [vmem:[%s455_s22 + $0x14] sm:$0xf0]  ;;  %v1176_v7 = vor.u32 %v1247_v62, %v1175_v59 }
  0x9b   : > { %v552_v2 = vand.u32 %v1200_v56, %v544_v47  ;;  %v1246_v5 = vld [vmem:[%s455_s22 + $0xc] sm:$0xf]  ;;  %563 = vmatpush.bf16.msra.mxu0 %v546_v60  ;;  %v555_v6 = vand.u32 %v1204_v61, %v544_v47  ;;  %v1185_v8 = vld [vmem:[%s455_s22 + $0x18] sm:$0xf0]  ;;  %v1180_v10 = vor.u32 %v1245_v63, %v1177_v0  ;;  %v1184_v11 = vor.u32 %v1248_v4, %v1183_v3  ;;  %s1253_s18 = sshll.u32 (%p1932_p5), %s1913_s15, 5  ;;  %s625_s24 = ssub.s32 (%p1932_p5), 13, %s1210_s12 }
  0x9c   : > { %576 = vmatpush.bf16.msra.mxu1 %v549_v1  ;;  %v1188_v12 = vor.u32 %v1246_v5, %v1185_v8  ;;  %s2222_s30 = scalar_lea.vmem (%p1932_p5), %s2513_s3, %s1253_s18   ;;  %p626_p8 = scmp.lt.s32.totalorder (%p1932_p5), %s625_s24, 4 }
  0x9d   : > { %589 = vmatpush.bf16.msra.mxu2 %v552_v2  ;;  %602 = vmatpush.bf16.msra.mxu3 %v555_v6 }
  0x9f   : > { %564 = vmatpush.bf16.msra.mxu0 %v1176_v7 }
  0xa0   : > { %577 = vmatpush.bf16.msra.mxu1 %v1180_v10 }
  0xa1   : > { %590 = vmatpush.bf16.msra.mxu2 %v1184_v11  ;;  %603 = vmatpush.bf16.msra.mxu3 %v1188_v12 }
  0xa2   : > { %1205 = vmatmul.msk.bf16.vlgmr.msra.gmra.mxu0 %vm537_vm2, %v486_v13 }
  0xa3   : > { %1206 = vmatmul.msk.bf16.vlgmr.msra.gmra.mxu1 %vm537_vm2, %v486_v13 }
  0xa4   : > { %1207 = vmatmul.msk.bf16.vlgmr.msra.gmra.mxu2 %vm537_vm2, %v486_v13  ;;  %1208 = vmatmul.msk.bf16.vlgmr.msra.gmra.mxu3 %vm537_vm2, %v486_v13 }
 0x107   : > { %v499_v14 = vpop.permute.xlu0 %498 }
 0x11f   : > { %v566_v15 = vpop.f32.mrf.mxu0 }
 0x120   : > { %v579_v16 = vpop.f32.mrf.mxu1  ;;  %v567_v17 = vadd.f32 %v566_v15, %v499_v14 }
 0x121   : > { %v580_v18 = vadd.f32 %v579_v16, %v499_v14 }
 0x122   : > { %v609_v19 = vmax.f32 %v567_v17, 0.0 }
 0x123   : > { %v610_v20 = vmax.f32 %v580_v18, 0.0 }
 0x124   : > { %613 = vst [vmem:[%s2209_s14] sm:$0x3f] %v609_v19 }
 0x125   : > { %614 = vst [vmem:[%s2209_s14 + $0x8] sm:$0x3f] %v610_v20 }
 0x127   : > { %v592_v21 = vpop.f32.mrf.mxu2  ;;  %v605_v23 = vpop.f32.mrf.mxu3 }
 0x128   : > { %v593_v22 = vadd.f32 %v592_v21, %v499_v14  ;;  %v568_v24 = vpop.f32.mrf.mxu0  ;;  %v606_v25 = vadd.f32 %v605_v23, %v499_v14  ;;  %v581_v26 = vpop.f32.mrf.mxu1 }
 0x12a   : > { %v611_v27 = vmax.f32 %v593_v22, 0.0  ;;  %v612_v28 = vmax.f32 %v606_v25, 0.0 }
 0x12b   : > { %623 = sbr.rel (!%p1932_p5) target bundleno = 452 (0x1c4), region = 106 }
 0x12c   : > { %615 = vst [vmem:[%s2209_s14 + $0x10] sm:$0x3f] %v611_v27 }
 0x12d   : > { %616 = vst [vmem:[%s2209_s14 + $0x18] sm:$0x3f] %v612_v28 }
 0x12f   : > { %v594_v29 = vpop.f32.mrf.mxu2  ;;  %v607_v30 = vpop.f32.mrf.mxu3 }
 0x130   : > { %s2556_s24 = smov (!%p626_p8, %s625_s24), 4 }
 0x131   : > { %s2224_s4 = sshll.u32 %s2556_s24, 3 }
 0x132   : > { %p1215_p9 = scmp.eq.s32.totalorder %s2224_s4, 0 }
 0x133   : > { %p636_p7 = scmp.lt.u32.totalorder (!%p1215_p9), %s2224_s4, 8 }
 0x134   : > { %635 = sbr.rel (%p1215_p9) target bundleno = 452 (0x1c4), region = 110 }
 0x139   : > { %639 = sbr.rel (%p636_p7) target bundleno = 443 (0x1bb), region = 114  ;;  %s2229_s21 = sand.u32 (!%p636_p7), 7, %s2224_s4  }
 0x13a   : > { %p656_p5 = scmp.eq.s32.totalorder (!%p636_p7), %s2229_s21, 0  ;;  %p1216_p10 = scmp.ne.s32.totalorder (!%p636_p7), %s2229_s21, 0 }
 0x13e   : > { %659 = sbr.rel (%p1216_p10) target bundleno = 378 (0x17a), region = 129  ;;  %s660_s15 = sshrl.u32 (!%p1216_p10), %s2224_s4, 3 }
 0x13f   : > { %s2236_s25 = sshrl.u32 (!%p1216_p10), %s660_s15, 5 }
 0x140   : > { %p1217_p11 = scmp.le.s32.totalorder (!%p1216_p10), %s2236_s25, 0 }
 0x143   : > { %1055 = sbr.rel (%p1217_p11) target bundleno = 361 (0x169), region = 278  ;;  %s2532_s28 = smov (!%p1217_p11), %s2222_s30 }
 0x144   : > { %s2533_s6 = smov (!%p1217_p11), %s2209_s14  ;;  %s2245_s7 = smov (!%p1217_p11), 0  }
 0x145   : > { %s2247_s9 = smov (!%p1217_p11), 0  }
 0x148 LB: >> { %v671_v31 = vld [vmem:[%s1812_s6] sm:$0xff]  ;;  %v673_v32 = vld [vmem:[%s1812_s6 + $0x8] sm:$0xff]  ;;  %v675_v33 = vld [vmem:[%s1812_s6 + $0x10] sm:$0xff]  ;;  %s735_s20 = sadd.s32 1, %s1816_s7  ;;  %s665_s9 = sadd.s32 1, %s1820_s9   ;;  %s1820_s9 = sphi %s2247_s9, %s665_s9   ;;  %s1816_s7 = sphi %s2245_s7, %s2536_s7   ;;  %s1812_s6 = sphi %s2533_s6, %s2535_s6   ;;  %s1808_s28 = sphi %s2532_s28, %s2534_s28  }
 0x149   : >> { %672 = vst [vmem:[%s1808_s28] sm:$0xff] %v671_v31  ;;  %v677_v34 = vld [vmem:[%s1812_s6 + $0x18] sm:$0xff]  ;;  %p736_p12 = scmp.ge.s32.totalorder %s735_s20, %s2236_s25  ;;  %v679_v35 = vld [vmem:[%s1812_s6 + $0x20] sm:$0xff]  ;;  %v681_v36 = vld [vmem:[%s1812_s6 + $0x28] sm:$0xff]  ;;  %p664_p13 = scmp.ge.s32.totalorder %s665_s9, %s2236_s25 }
 0x14a   : >> { %674 = vst [vmem:[%s1808_s28 + $0x8] sm:$0xff] %v673_v32  ;;  %v683_v37 = vld [vmem:[%s1812_s6 + $0x30] sm:$0xff]  ;;  %v685_v38 = vld [vmem:[%s1812_s6 + $0x38] sm:$0xff]  ;;  %v687_v39 = vld [vmem:[%s1812_s6 + $0x40] sm:$0xff] }
 0x14b   : >> { %676 = vst [vmem:[%s1808_s28 + $0x10] sm:$0xff] %v675_v33  ;;  %s2558_s20 = smov (%p736_p12, %s735_s20), 0  ;;  %v689_v40 = vld [vmem:[%s1812_s6 + $0x48] sm:$0xff]  ;;  %v691_v41 = vld [vmem:[%s1812_s6 + $0x50] sm:$0xff]  ;;  %v693_v42 = vld [vmem:[%s1812_s6 + $0x58] sm:$0xff] }
 0x14c   : >> { %678 = vst [vmem:[%s1808_s28 + $0x18] sm:$0xff] %v677_v34  ;;  %s1218_s17 = sshll.u32 %s2558_s20, 8  ;;  %v695_v43 = vld [vmem:[%s1812_s6 + $0x60] sm:$0xff]  ;;  %v697_v44 = vld [vmem:[%s1812_s6 + $0x68] sm:$0xff]  ;;  %v699_v45 = vld [vmem:[%s1812_s6 + $0x70] sm:$0xff]  ;;  %s2536_s7 = smov %s2558_s20 }
 0x14d   : >> { %680 = vst [vmem:[%s1808_s28 + $0x20] sm:$0xff] %v679_v35  ;;  %s2279_s23 = scalar_lea.vmem %s2209_s14, %s1218_s17 [#allocation5]   ;;  %s2282_s10 = scalar_lea.vmem %s2222_s30, %s1218_s17   ;;  %v701_v46 = vld [vmem:[%s1812_s6 + $0x78] sm:$0xff]  ;;  %v703_v47 = vld [vmem:[%s1812_s6 + $0x80] sm:$0xff]  ;;  %v705_v48 = vld [vmem:[%s1812_s6 + $0x88] sm:$0xff] }
 0x14e   : >> { %682 = vst [vmem:[%s1808_s28 + $0x28] sm:$0xff] %v681_v36  ;;  %v707_v49 = vld [vmem:[%s1812_s6 + $0x90] sm:$0xff]  ;;  %v709_v50 = vld [vmem:[%s1812_s6 + $0x98] sm:$0xff]  ;;  %v711_v51 = vld [vmem:[%s1812_s6 + $0xa0] sm:$0xff] }
 0x14f   : >> { %684 = vst [vmem:[%s1808_s28 + $0x30] sm:$0xff] %v683_v37  ;;  %v713_v52 = vld [vmem:[%s1812_s6 + $0xa8] sm:$0xff]  ;;  %v715_v53 = vld [vmem:[%s1812_s6 + $0xb0] sm:$0xff]  ;;  %v717_v54 = vld [vmem:[%s1812_s6 + $0xb8] sm:$0xff] }
 0x150   : >> { %686 = vst [vmem:[%s1808_s28 + $0x38] sm:$0xff] %v685_v38  ;;  %v719_v55 = vld [vmem:[%s1812_s6 + $0xc0] sm:$0xff]  ;;  %v721_v56 = vld [vmem:[%s1812_s6 + $0xc8] sm:$0xff]  ;;  %v723_v57 = vld [vmem:[%s1812_s6 + $0xd0] sm:$0xff] }
 0x151   : >> { %688 = vst [vmem:[%s1808_s28 + $0x40] sm:$0xff] %v687_v39  ;;  %v725_v58 = vld [vmem:[%s1812_s6 + $0xd8] sm:$0xff]  ;;  %v727_v59 = vld [vmem:[%s1812_s6 + $0xe0] sm:$0xff]  ;;  %v729_v60 = vld [vmem:[%s1812_s6 + $0xe8] sm:$0xff] }
 0x152   : >> { %690 = vst [vmem:[%s1808_s28 + $0x48] sm:$0xff] %v689_v40  ;;  %v731_v61 = vld [vmem:[%s1812_s6 + $0xf0] sm:$0xff]  ;;  %v733_v62 = vld [vmem:[%s1812_s6 + $0xf8] sm:$0xff]  ;;  %s2535_s6 = smov %s2279_s23 }
 0x153   : >> { %692 = vst [vmem:[%s1808_s28 + $0x50] sm:$0xff] %v691_v41 }
 0x154   : >> { %694 = vst [vmem:[%s1808_s28 + $0x58] sm:$0xff] %v693_v42 }
 0x155   : >> { %696 = vst [vmem:[%s1808_s28 + $0x60] sm:$0xff] %v695_v43 }
 0x156   : >> { %698 = vst [vmem:[%s1808_s28 + $0x68] sm:$0xff] %v697_v44 }
 0x157   : >> { %700 = vst [vmem:[%s1808_s28 + $0x70] sm:$0xff] %v699_v45 }
 0x158   : >> { %702 = vst [vmem:[%s1808_s28 + $0x78] sm:$0xff] %v701_v46 }
 0x159   : >> { %704 = vst [vmem:[%s1808_s28 + $0x80] sm:$0xff] %v703_v47 }
 0x15a   : >> { %706 = vst [vmem:[%s1808_s28 + $0x88] sm:$0xff] %v705_v48 }
 0x15b   : >> { %708 = vst [vmem:[%s1808_s28 + $0x90] sm:$0xff] %v707_v49 }
 0x15c   : >> { %710 = vst [vmem:[%s1808_s28 + $0x98] sm:$0xff] %v709_v50 }
 0x15d   : >> { %712 = vst [vmem:[%s1808_s28 + $0xa0] sm:$0xff] %v711_v51 }
 0x15e   : >> { %714 = vst [vmem:[%s1808_s28 + $0xa8] sm:$0xff] %v713_v52 }
 0x15f   : >> { %716 = vst [vmem:[%s1808_s28 + $0xb0] sm:$0xff] %v715_v53 }
 0x160   : >> { %718 = vst [vmem:[%s1808_s28 + $0xb8] sm:$0xff] %v717_v54 }
 0x161   : >> { %720 = vst [vmem:[%s1808_s28 + $0xc0] sm:$0xff] %v719_v55 }
 0x162   : >> { %722 = vst [vmem:[%s1808_s28 + $0xc8] sm:$0xff] %v721_v56 }
 0x163   : >> { %724 = vst [vmem:[%s1808_s28 + $0xd0] sm:$0xff] %v723_v57 }
 0x164   : >> { %726 = vst [vmem:[%s1808_s28 + $0xd8] sm:$0xff] %v725_v58  ;;  %667 = sbr.rel (!%p664_p13) target bundleno = 328 (0x148), region = 284 }
 0x165   : >> { %728 = vst [vmem:[%s1808_s28 + $0xe0] sm:$0xff] %v727_v59 }
 0x166   : >> { %730 = vst [vmem:[%s1808_s28 + $0xe8] sm:$0xff] %v729_v60 }
 0x167   : >> { %732 = vst [vmem:[%s1808_s28 + $0xf0] sm:$0xff] %v731_v61 }
 0x168   : >> { %734 = vst [vmem:[%s1808_s28 + $0xf8] sm:$0xff] %v733_v62  ;;  %s2534_s28 = smov %s2282_s10 }
 0x169 PF: > { %s2348_s8 = sand.u32 31, %s660_s15   ;;  %s1254_s22 = sshll.u32 %s2236_s25, 8 }
 0x16a   : > { %s746_s11 = scalar_lea.vmem %s2209_s14, %s1254_s22 [#allocation5]   ;;  %s748_s26 = scalar_lea.vmem %s2222_s30, %s1254_s22  }
 0x16b   : > { %p1223_p0 = scmp.le.s32.totalorder %s2348_s8, 0 }
 0x16c   : > { %s1822_s27 = smov (!%p1223_p0), %s748_s26   ;;  %s1826_s12 = smov (!%p1223_p0), %s746_s11  }
 0x16d   : > { %1069 = sbr.rel (%p1223_p0) target bundleno = 378 (0x17a), region = 289  ;;  %s1830_s18 = smov (!%p1223_p0), 0  }
 0x16e   : > { %s1834_s24 = smov (!%p1223_p0), 0  }
 0x172 LB: >> { %v758_v63 = vld [vmem:[%s1828_s12] sm:$0xff]  ;;  %s760_s5 = sadd.s32 1, %s1832_s18  ;;  %s752_s24 = sadd.s32 1, %s1836_s24   ;;  %s1836_s24 = sphi %s1834_s24, %s752_s24   ;;  %s1832_s18 = sphi %s1830_s18, %s1831_s18   ;;  %s1828_s12 = sphi %s1826_s12, %s765_s12   ;;  %s1824_s27 = sphi %s1822_s27, %s766_s27  }
 0x173   : >> { %759 = vst [vmem:[%s1824_s27] sm:$0xff] %v758_v63  ;;  %p761_p1 = scmp.ge.s32.totalorder %s760_s5, %s2348_s8  ;;  %p751_p2 = scmp.ge.s32.totalorder %s752_s24, %s2348_s8 }
 0x175   : >> { %s2560_s5 = smov (%p761_p1, %s760_s5), 0  ;;  %754 = sbr.rel (!%p751_p2) target bundleno = 370 (0x172), region = 295 }
 0x176   : >> { %s1224_s29 = sshll.u32 %s2560_s5, 3  ;;  %s1831_s18 = smov %s2560_s5  }
 0x177   : >> { %s765_s12 = scalar_lea.vmem %s746_s11, %s1224_s29 [#allocation5]   ;;  %s766_s27 = scalar_lea.vmem %s748_s26, %s1224_s29  }
 0x17a PF: > { %769 = sbr.rel (%p656_p5) target bundleno = 443 (0x1bb), region = 147  ;;  %s2360_s15 = ssub.s32 (!%p656_p5), %s2224_s4, %s2229_s21 }
 0x17b   : > { %s775_s25 = sshrl.u32 (!%p656_p5), %s2224_s4, 3  ;;  %s772_s28 = scalar_lea.vmem (!%p656_p5), %s2209_s14, %s2360_s15 [#allocation5] }
 0x17c   : > { %s774_s6 = scalar_lea.vmem (!%p656_p5), %s2222_s30, %s2360_s15  ;;  %s2369_s7 = sshrl.u32 (!%p656_p5), %s775_s25, 5 }
 0x17d   : > { %p1226_p3 = scmp.le.s32.totalorder (!%p656_p5), %s2369_s7, 0 }
 0x17f   : > { %1083 = sbr.rel (%p1226_p3) target bundleno = 421 (0x1a5), region = 300  ;;  %s2537_s9 = smov (!%p1226_p3), %s2222_s30 }
 0x180   : > { %s2538_s20 = smov (!%p1226_p3), %s2209_s14  ;;  %s2378_s17 = smov (!%p1226_p3), 0  }
 0x181   : > { %s2380_s23 = smov (!%p1226_p3), 0  }
 0x184 LB: >> { %v786_v0 = vld [vmem:[%s1844_s20] sm:$0xff]  ;;  %v788_v1 = vld [vmem:[%s1844_s20 + $0x8] sm:$0xff]  ;;  %v790_v2 = vld [vmem:[%s1844_s20 + $0x10] sm:$0xff]  ;;  %s850_s10 = sadd.s32 1, %s1848_s17  ;;  %s780_s23 = sadd.s32 1, %s1852_s23   ;;  %s1852_s23 = sphi %s2380_s23, %s780_s23   ;;  %s1848_s17 = sphi %s2378_s17, %s2541_s17   ;;  %s1844_s20 = sphi %s2538_s20, %s2540_s20   ;;  %s1840_s9 = sphi %s2537_s9, %s2539_s9  }
 0x185   : >> { %787 = vst [vmem:[%s1840_s9] sm:$0xff] %v786_v0  ;;  %v792_v3 = vld [vmem:[%s1844_s20 + $0x18] sm:$0xff]  ;;  %p851_p4 = scmp.ge.s32.totalorder %s850_s10, %s2369_s7  ;;  %v794_v4 = vld [vmem:[%s1844_s20 + $0x20] sm:$0xff]  ;;  %v796_v5 = vld [vmem:[%s1844_s20 + $0x28] sm:$0xff]  ;;  %p779_p6 = scmp.ge.s32.totalorder %s780_s23, %s2369_s7 }
 0x186   : >> { %789 = vst [vmem:[%s1840_s9 + $0x8] sm:$0xff] %v788_v1  ;;  %v798_v6 = vld [vmem:[%s1844_s20 + $0x30] sm:$0xff]  ;;  %v800_v7 = vld [vmem:[%s1844_s20 + $0x38] sm:$0xff]  ;;  %v802_v8 = vld [vmem:[%s1844_s20 + $0x40] sm:$0xff] }
 0x187   : >> { %791 = vst [vmem:[%s1840_s9 + $0x10] sm:$0xff] %v790_v2  ;;  %s2562_s10 = smov (%p851_p4, %s850_s10), 0  ;;  %v804_v9 = vld [vmem:[%s1844_s20 + $0x48] sm:$0xff]  ;;  %v806_v10 = vld [vmem:[%s1844_s20 + $0x50] sm:$0xff]  ;;  %v808_v11 = vld [vmem:[%s1844_s20 + $0x58] sm:$0xff] }
 0x188   : >> { %793 = vst [vmem:[%s1840_s9 + $0x18] sm:$0xff] %v792_v3  ;;  %s1227_s8 = sshll.u32 %s2562_s10, 8  ;;  %v810_v12 = vld [vmem:[%s1844_s20 + $0x60] sm:$0xff]  ;;  %v812_v13 = vld [vmem:[%s1844_s20 + $0x68] sm:$0xff]  ;;  %v814_v14 = vld [vmem:[%s1844_s20 + $0x70] sm:$0xff]  ;;  %s2541_s17 = smov %s2562_s10 }
 0x189   : >> { %795 = vst [vmem:[%s1840_s9 + $0x20] sm:$0xff] %v794_v4  ;;  %s2412_s22 = scalar_lea.vmem %s2209_s14, %s1227_s8 [#allocation5]   ;;  %s2415_s11 = scalar_lea.vmem %s2222_s30, %s1227_s8   ;;  %v816_v15 = vld [vmem:[%s1844_s20 + $0x78] sm:$0xff]  ;;  %v818_v16 = vld [vmem:[%s1844_s20 + $0x80] sm:$0xff]  ;;  %v820_v17 = vld [vmem:[%s1844_s20 + $0x88] sm:$0xff] }
 0x18a   : >> { %797 = vst [vmem:[%s1840_s9 + $0x28] sm:$0xff] %v796_v5  ;;  %v822_v18 = vld [vmem:[%s1844_s20 + $0x90] sm:$0xff]  ;;  %v824_v19 = vld [vmem:[%s1844_s20 + $0x98] sm:$0xff]  ;;  %v826_v20 = vld [vmem:[%s1844_s20 + $0xa0] sm:$0xff] }
 0x18b   : >> { %799 = vst [vmem:[%s1840_s9 + $0x30] sm:$0xff] %v798_v6  ;;  %v828_v21 = vld [vmem:[%s1844_s20 + $0xa8] sm:$0xff]  ;;  %v830_v22 = vld [vmem:[%s1844_s20 + $0xb0] sm:$0xff]  ;;  %v832_v23 = vld [vmem:[%s1844_s20 + $0xb8] sm:$0xff] }
 0x18c   : >> { %801 = vst [vmem:[%s1840_s9 + $0x38] sm:$0xff] %v800_v7  ;;  %v834_v24 = vld [vmem:[%s1844_s20 + $0xc0] sm:$0xff]  ;;  %v836_v25 = vld [vmem:[%s1844_s20 + $0xc8] sm:$0xff]  ;;  %v838_v26 = vld [vmem:[%s1844_s20 + $0xd0] sm:$0xff] }
 0x18d   : >> { %803 = vst [vmem:[%s1840_s9 + $0x40] sm:$0xff] %v802_v8  ;;  %v840_v27 = vld [vmem:[%s1844_s20 + $0xd8] sm:$0xff]  ;;  %v842_v28 = vld [vmem:[%s1844_s20 + $0xe0] sm:$0xff]  ;;  %v844_v29 = vld [vmem:[%s1844_s20 + $0xe8] sm:$0xff] }
 0x18e   : >> { %805 = vst [vmem:[%s1840_s9 + $0x48] sm:$0xff] %v804_v9  ;;  %v846_v30 = vld [vmem:[%s1844_s20 + $0xf0] sm:$0xff]  ;;  %v848_v31 = vld [vmem:[%s1844_s20 + $0xf8] sm:$0xff]  ;;  %s2540_s20 = smov %s2412_s22 }
 0x18f   : >> { %807 = vst [vmem:[%s1840_s9 + $0x50] sm:$0xff] %v806_v10 }
 0x190   : >> { %809 = vst [vmem:[%s1840_s9 + $0x58] sm:$0xff] %v808_v11 }
 0x191   : >> { %811 = vst [vmem:[%s1840_s9 + $0x60] sm:$0xff] %v810_v12 }
 0x192   : >> { %813 = vst [vmem:[%s1840_s9 + $0x68] sm:$0xff] %v812_v13 }
 0x193   : >> { %815 = vst [vmem:[%s1840_s9 + $0x70] sm:$0xff] %v814_v14 }
 0x194   : >> { %817 = vst [vmem:[%s1840_s9 + $0x78] sm:$0xff] %v816_v15 }
 0x195   : >> { %819 = vst [vmem:[%s1840_s9 + $0x80] sm:$0xff] %v818_v16 }
 0x196   : >> { %821 = vst [vmem:[%s1840_s9 + $0x88] sm:$0xff] %v820_v17 }
 0x197   : >> { %823 = vst [vmem:[%s1840_s9 + $0x90] sm:$0xff] %v822_v18 }
 0x198   : >> { %825 = vst [vmem:[%s1840_s9 + $0x98] sm:$0xff] %v824_v19 }
 0x199   : >> { %827 = vst [vmem:[%s1840_s9 + $0xa0] sm:$0xff] %v826_v20 }
 0x19a   : >> { %829 = vst [vmem:[%s1840_s9 + $0xa8] sm:$0xff] %v828_v21 }
 0x19b   : >> { %831 = vst [vmem:[%s1840_s9 + $0xb0] sm:$0xff] %v830_v22 }
 0x19c   : >> { %833 = vst [vmem:[%s1840_s9 + $0xb8] sm:$0xff] %v832_v23 }
 0x19d   : >> { %835 = vst [vmem:[%s1840_s9 + $0xc0] sm:$0xff] %v834_v24 }
 0x19e   : >> { %837 = vst [vmem:[%s1840_s9 + $0xc8] sm:$0xff] %v836_v25 }
 0x19f   : >> { %839 = vst [vmem:[%s1840_s9 + $0xd0] sm:$0xff] %v838_v26 }
 0x1a0   : >> { %841 = vst [vmem:[%s1840_s9 + $0xd8] sm:$0xff] %v840_v27  ;;  %782 = sbr.rel (!%p779_p6) target bundleno = 388 (0x184), region = 306 }
 0x1a1   : >> { %843 = vst [vmem:[%s1840_s9 + $0xe0] sm:$0xff] %v842_v28 }
 0x1a2   : >> { %845 = vst [vmem:[%s1840_s9 + $0xe8] sm:$0xff] %v844_v29 }
 0x1a3   : >> { %847 = vst [vmem:[%s1840_s9 + $0xf0] sm:$0xff] %v846_v30 }
 0x1a4   : >> { %849 = vst [vmem:[%s1840_s9 + $0xf8] sm:$0xff] %v848_v31  ;;  %s2539_s9 = smov %s2415_s11 }
 0x1a5 PF: > { %s2481_s26 = sand.u32 31, %s775_s25   ;;  %s1256_s27 = sshll.u32 %s2369_s7, 8 }
 0x1a6   : > { %s861_s12 = scalar_lea.vmem %s2209_s14, %s1256_s27 [#allocation5]   ;;  %s863_s18 = scalar_lea.vmem %s2222_s30, %s1256_s27  }
 0x1a7   : > { %p1232_p8 = scmp.le.s32.totalorder %s2481_s26, 0 }
 0x1a8   : > { %s1854_s24 = smov (!%p1232_p8), %s863_s18   ;;  %s1858_s5 = smov (!%p1232_p8), %s861_s12  }
 0x1a9   : > { %1097 = sbr.rel (%p1232_p8) target bundleno = 438 (0x1b6), region = 311  ;;  %s1862_s29 = smov (!%p1232_p8), 0  }
 0x1aa   : > { %s1866_s10 = smov (!%p1232_p8), 0  }
 0x1ae LB: >> { %v873_v32 = vld [vmem:[%s1860_s5] sm:$0xff]  ;;  %s875_s25 = sadd.s32 1, %s1864_s29  ;;  %s867_s10 = sadd.s32 1, %s1868_s10   ;;  %s1868_s10 = sphi %s1866_s10, %s867_s10   ;;  %s1864_s29 = sphi %s1862_s29, %s1863_s29   ;;  %s1860_s5 = sphi %s1858_s5, %s880_s5   ;;  %s1856_s24 = sphi %s1854_s24, %s881_s24  }
 0x1af   : >> { %874 = vst [vmem:[%s1856_s24] sm:$0xff] %v873_v32  ;;  %p876_p9 = scmp.ge.s32.totalorder %s875_s25, %s2481_s26  ;;  %p866_p7 = scmp.ge.s32.totalorder %s867_s10, %s2481_s26 }
 0x1b1   : >> { %s2564_s25 = smov (%p876_p9, %s875_s25), 0  ;;  %869 = sbr.rel (!%p866_p7) target bundleno = 430 (0x1ae), region = 317 }
 0x1b2   : >> { %s1233_s7 = sshll.u32 %s2564_s25, 3  ;;  %s1863_s29 = smov %s2564_s25  }
 0x1b3   : >> { %s880_s5 = scalar_lea.vmem %s861_s12, %s1233_s7 [#allocation5]   ;;  %s881_s24 = scalar_lea.vmem %s863_s18, %s1233_s7  }
 0x1b6 PF: > { %s1875_s9 = smov 1  }
 0x1b7   : > { %s882_s20 = sshll.u32 %s1875_s9, %s2229_s21 }
 0x1b8   : > { %s1235_s17 = sadd.s32 4294967295, %s882_s20 }
 0x1b9   : > { %v892_v33 = vld [vmem:[%s772_s28] sm:%s1235_s17] }
 0x1ba   : > { %893 = vst [vmem:[%s774_s6] sm:%s1235_s17] %v892_v33 }
 0x1bb PF: > { %p1236_p5 = scmp.ge.u32.totalorder %s2224_s4, 8 }
 0x1bc   : > { %s1876_s23 = smov (!%p1236_p5), 1  }
 0x1bd   : > { %642 = sbr.rel (%p1236_p5) target bundleno = 452 (0x1c4), region = 118  ;;  %s643_s8 = sshll.u32 (!%p1236_p5), %s1876_s23, %s2224_s4 }
 0x1be   : > { %s1237_s22 = sadd.s32 (!%p1236_p5), 4294967295, %s643_s8 }
 0x1c2   : > { %v653_v34 = vld [vmem:[%s2209_s14] sm:%s1237_s22] }
 0x1c3   : > { %654 = vst [vmem:[%s2222_s30] sm:%s1237_s22] %v653_v34 }
 0x1c4 PF: > { %p11_p10 = scmp.ge.s32.totalorder %s1916_s16, 6   ;;  %s2542_s12 = smov %s1736_s13 }
 0x1c5   : > { %s2543_s13 = smov %s1926_s19  ;;  %s2544_s14 = smov %s1916_s16 }
 0x1c6   :  { %13 = sbr.rel (!%p11_p10) target bundleno = 2 (0x2), region = 328 }
 0x1cb   :  { %907 = vsyncpa [#allocation3], 1 }
 0x1cc   :  { %909 = vsyncpa [#allocation3 + $0x1], 1 }

// kernel: lenet_forward.4
= control target key start
LH: loop header
LB: loop body
LE: loop exit
PB: predicated region body
PF: predicated region fallthrough
CT: control target
= control target key end

     0   :  { %vm156_vm0 = vcmask 1042432   ;;  %v335_v46 = vmov 0   ;;  %vm152_vm1 = vcmask 179200   ;;  %s499_s1 = inlined_call_operand.vmem [shape: bf16[150,200], index: 1, kind: input, shape index: {}]   ;;  %s500_s0 = inlined_call_operand.vmem [shape: bf16[16,150], index: 0, kind: input, shape index: {}]   ;;  %s501_s2 = inlined_call_operand.vmem [shape: f32[16,1], index: 2, kind: input, shape index: {}]   ;;  %s502_s3 = inlined_call_operand.vmem [shape: f32[16,200], index: 3, kind: output, shape index: {}]  }
   0x1   :  { %v297_v0 = vld [vmem:[%s499_s1 + $0x70] sm:$0xf]  ;;  %v330_v1 = vld [vmem:[%s499_s1 + $0x74] sm:$0xf0]  ;;  %v329_v2 = vld [vmem:[%s499_s1 + $0x74] sm:$0xf]  ;;  %334 = vset.pattern.permute.xlu0 %v335_v46 }
   0x2   :  { %v298_v3 = vor.u32 %v330_v1, %v297_v0  ;;  %v299_v4 = vld [vmem:[%s499_s1 + $0x78] sm:$0xf0]  ;;  %v289_v5 = vld [vmem:[%s499_s1 + $0x60] sm:$0xf]  ;;  %v328_v6 = vld [vmem:[%s499_s1 + $0x64] sm:$0xf0] }
   0x3   :  { %v302_v7 = vor.u32 %v329_v2, %v299_v4  ;;  %v327_v8 = vld [vmem:[%s499_s1 + $0x64] sm:$0xf]  ;;  %v291_v9 = vld [vmem:[%s499_s1 + $0x68] sm:$0xf0]  ;;  %v290_v10 = vor.u32 %v328_v6, %v289_v5  ;;  %v281_v12 = vld [vmem:[%s499_s1 + $0x50] sm:$0xf] }
   0x4   :  { %163 = vmatpush.bf16.msra.mxu0 %v298_v3  ;;  %v294_v11 = vor.u32 %v327_v8, %v291_v9  ;;  %v326_v13 = vld [vmem:[%s499_s1 + $0x54] sm:$0xf0]  ;;  %v325_v14 = vld [vmem:[%s499_s1 + $0x54] sm:$0xf]  ;;  %v283_v15 = vld [vmem:[%s499_s1 + $0x58] sm:$0xf0] }
   0x5   :  { %191 = vmatpush.bf16.msra.mxu2 %v302_v7  ;;  %v35_v16 = vld [vmem:[%s499_s1 + $0x90] sm:$0x77]  ;;  %v282_v17 = vor.u32 %v326_v13, %v281_v12  ;;  %v286_v20 = vor.u32 %v325_v14, %v283_v15  ;;  %v273_v21 = vld [vmem:[%s499_s1 + $0x40] sm:$0xf]  ;;  %v324_v22 = vld [vmem:[%s499_s1 + $0x44] sm:$0xf0] }
   0x6   :  { %v113_v18 = vunpack.c.h.b16 %v35_v16  ;;  %v112_v19 = vunpack.c.l.b16 %v35_v16  ;;  %v323_v23 = vld [vmem:[%s499_s1 + $0x44] sm:$0xf]  ;;  %v275_v24 = vld [vmem:[%s499_s1 + $0x48] sm:$0xf0]  ;;  %v265_v29 = vld [vmem:[%s499_s1 + $0x30] sm:$0xf]  ;;  %v274_v30 = vor.u32 %v324_v22, %v273_v21 }
   0x7   :  { %v331_v26 = vld [vmem:[%s499_s1 + $0x84] sm:$0xf]  ;;  %v307_v27 = vld [vmem:[%s499_s1 + $0x88] sm:$0xf0]  ;;  %v322_v31 = vld [vmem:[%s499_s1 + $0x34] sm:$0xf0]  ;;  %v278_v35 = vor.u32 %v323_v23, %v275_v24 }
   0x8   :  { %164 = vmatpush.bf16.msra.mxu0 %v290_v10  ;;  %v133_v25 = vpack.c.b16 %v113_v18, %v113_v18  ;;  %v132_v28 = vpack.c.b16 %v112_v19, %v112_v19  ;;  %v313_v34 = vld [vmem:[%s500_s0 + $0x4] sm:$0xf]  ;;  %v310_v36 = vor.u32 %v331_v26, %v307_v27  ;;  %v235_v37 = vld [vmem:[%s500_s0 + $0x8] sm:$0xf0]  ;;  %v305_v38 = vld [vmem:[%s499_s1 + $0x80] sm:$0xf]  ;;  %v266_v44 = vor.u32 %v322_v31, %v265_v29 }
   0x9   :  { %192 = vmatpush.bf16.msra.mxu2 %v294_v11  ;;  %v332_v39 = vld [vmem:[%s499_s1 + $0x84] sm:$0xf0]  ;;  %v321_v40 = vld [vmem:[%s499_s1 + $0x34] sm:$0xf]  ;;  %v267_v41 = vld [vmem:[%s499_s1 + $0x38] sm:$0xf0]  ;;  %v238_v45 = vor.u32 %v313_v34, %v235_v37 }
   0xa   :  { %v161_v32 = vsel %vm156_vm0, %v133_v25, 0  ;;  %v158_v33 = vsel %vm156_vm0, %v132_v28, 0  ;;  %v306_v42 = vor.u32 %v332_v39, %v305_v38  ;;  %v36_v43 = vld [vmem:[%s501_s2] sm:$0xff]  ;;  %v270_v47 = vor.u32 %v321_v40, %v267_v41  ;;  %v320_v49 = vld [vmem:[%s499_s1 + $0x24] sm:$0xf0] }
   0xb   :  { %211 = vmatpush.bf16.msra.mxu3 %v161_v32  ;;  %183 = vmatpush.bf16.msra.mxu1 %v158_v33  ;;  %v257_v48 = vld [vmem:[%s499_s1 + $0x20] sm:$0xf]  ;;  %v319_v50 = vld [vmem:[%s499_s1 + $0x24] sm:$0xf]  ;;  %v259_v51 = vld [vmem:[%s499_s1 + $0x28] sm:$0xf0] }
   0xc   :  { %165 = vmatpush.bf16.msra.mxu0 %v282_v17  ;;  %40 = vperm.xlu0 %334, %v36_v43   ;;  %v258_v52 = vor.u32 %v320_v49, %v257_v48  ;;  %v262_v53 = vor.u32 %v319_v50, %v259_v51  ;;  %v249_v54 = vld [vmem:[%s499_s1 + $0x10] sm:$0xf]  ;;  %v318_v55 = vld [vmem:[%s499_s1 + $0x14] sm:$0xf0]  ;;  %v317_v56 = vld [vmem:[%s499_s1 + $0x14] sm:$0xf] }
   0xd   :  { %193 = vmatpush.bf16.msra.mxu2 %v286_v20  ;;  %v251_v57 = vld [vmem:[%s499_s1 + $0x18] sm:$0xf0]  ;;  %v37_v58 = vld [vmem:[%s501_s2 + $0x8] sm:$0xff]  ;;  %v250_v59 = vor.u32 %v318_v55, %v249_v54  ;;  %v241_v61 = vld [vmem:[%s499_s1] sm:$0xf] }
   0xe   :  { %v254_v60 = vor.u32 %v317_v56, %v251_v57  ;;  %v316_v62 = vld [vmem:[%s499_s1 + $0x4] sm:$0xf0]  ;;  %v315_v63 = vld [vmem:[%s499_s1 + $0x4] sm:$0xf]  ;;  %v243_v0 = vld [vmem:[%s499_s1 + $0x8] sm:$0xf0] }
   0xf   :  { %212 = vmatpush.bf16.msra.mxu3 %v310_v36  ;;  %184 = vmatpush.bf16.msra.mxu1 %v306_v42  ;;  %v242_v1 = vor.u32 %v316_v62, %v241_v61  ;;  %v233_v2 = vld [vmem:[%s500_s0] sm:$0xf]  ;;  %v314_v3 = vld [vmem:[%s500_s0 + $0x4] sm:$0xf0]  ;;  %v246_v4 = vor.u32 %v315_v63, %v243_v0 }
  0x10   :  { %166 = vmatpush.bf16.msra.mxu0 %v274_v30  ;;  %v234_v5 = vor.u32 %v314_v3, %v233_v2 }
  0x11   :  { %194 = vmatpush.bf16.msra.mxu2 %v278_v35 }
  0x12   :  { %312 = vmatmul.msk.bf16.vlgmr.msra.gmra.mxu3 %vm152_vm1, %v238_v45  ;;  %311 = vmatmul.msk.bf16.vlgmr.msra.gmra.mxu1 %vm152_vm1, %v238_v45 }
  0x14   :  { %167 = vmatpush.bf16.msra.mxu0 %v266_v44  ;;  %45 = vperm.xlu0 %334, %v37_v58  }
  0x15   :  { %195 = vmatpush.bf16.msra.mxu2 %v270_v47 }
  0x18   :  { %168 = vmatpush.bf16.msra.mxu0 %v258_v52 }
  0x19   :  { %196 = vmatpush.bf16.msra.mxu2 %v262_v53 }
  0x1c   :  { %169 = vmatpush.bf16.msra.mxu0 %v250_v59 }
  0x1d   :  { %197 = vmatpush.bf16.msra.mxu2 %v254_v60 }
  0x20   :  { %170 = vmatpush.bf16.msra.mxu0 %v242_v1 }
  0x21   :  { %198 = vmatpush.bf16.msra.mxu2 %v246_v4 }
  0x23   :  { %171 = vmatmul.bf16.vlgmr.msra.gmra.mxu0 %v234_v5 }
  0x24   :  { %199 = vmatmul.bf16.vlgmr.msra.gmra.mxu2 %v234_v5 }
  0x7e   :  { %v41_v6 = vpop.permute.xlu0 %40 }
  0x86   :  { %v46_v14 = vpop.permute.xlu0 %45 }
  0x8f   :  { %v186_v8 = vpop.f32.mrf.mxu1 }
  0x95   :  { %v214_v12 = vpop.f32.mrf.mxu3 }
  0x97   :  { %v188_v19 = vpop.f32.mrf.mxu1 }
  0x9d   :  { %v216_v25 = vpop.f32.mrf.mxu3 }
  0xa0   :  { %v172_v7 = vpop.f32.mrf.mxu0 }
  0xa1   :  { %v173_v9 = vadd.f32 %v172_v7, %v41_v6 }
  0xa3   :  { %v187_v10 = vadd.f32 %v186_v8, %v173_v9 }
  0xa5   :  { %v219_v11 = vmax.f32 %v187_v10, 0.0 }
  0xa7   :  { %223 = vst [vmem:[%s502_s3] sm:$0xff] %v219_v11  ;;  %v200_v13 = vpop.f32.mrf.mxu2 }
  0xa8   :  { %v201_v15 = vadd.f32 %v200_v13, %v41_v6  ;;  %v174_v16 = vpop.f32.mrf.mxu0 }
  0xa9   :  { %v175_v17 = vadd.f32 %v174_v16, %v46_v14 }
  0xaa   :  { %v215_v18 = vadd.f32 %v214_v12, %v201_v15 }
  0xab   :  { %v189_v20 = vadd.f32 %v188_v19, %v175_v17 }
  0xac   :  { %v220_v21 = vmax.f32 %v215_v18, 0.0 }
  0xad   :  { %v221_v22 = vmax.f32 %v189_v20, 0.0 }
  0xae   :  { %224 = vst [vmem:[%s502_s3 + $0x8] sm:$0xff] %v220_v21 }
  0xaf   :  { %225 = vst [vmem:[%s502_s3 + $0x10] sm:$0xff] %v221_v22  ;;  %v202_v23 = vpop.f32.mrf.mxu2 }
  0xb0   :  { %v203_v24 = vadd.f32 %v202_v23, %v46_v14 }
  0xb2   :  { %v217_v26 = vadd.f32 %v216_v25, %v203_v24 }
  0xb4   :  { %v222_v27 = vmax.f32 %v217_v26, 0.0 }
  0xb6   :  { %226 = vst [vmem:[%s502_s3 + $0x18] sm:$0xff] %v222_v27 }

// kernel: lenet_forward.5
= control target key start
LH: loop header
LB: loop body
LE: loop exit
PB: predicated region body
PF: predicated region fallthrough
CT: control target
= control target key end

     0   :  { %v1280_v3 = vmov 0   ;;  %vm493_vm0 = vcmask 130048   ;;  %vm857_vm1 = vcmask 1043456   ;;  %vm838_vm2 = vcmask 982016   ;;  %s1737_s0 = inlined_call_operand.vmem [shape: bf16[400,2], index: 0, kind: input, shape index: {}]   ;;  %s1738_s2 = inlined_call_operand.vmem [shape: f32[120,1], index: 2, kind: input, shape index: {}]   ;;  %s1739_s1 = inlined_call_operand.vmem [shape: bf16[120,400], index: 1, kind: input, shape index: {}]   ;;  %s1740_s4 = inlined_call_operand.vmem [shape: f32[84,1], index: 4, kind: input, shape index: {}]   ;;  %s1741_s6 = inlined_call_operand.vmem [shape: f32[10,1], index: 6, kind: input, shape index: {}]   ;;  %s1742_s3 = inlined_call_operand.vmem [shape: bf16[84,120], index: 3, kind: input, shape index: {}]   ;;  %s1743_s5 = inlined_call_operand.vmem [shape: bf16[10,84], index: 5, kind: input, shape index: {}]   ;;  %s1744_s7 = inlined_call_operand.vmem [shape: f32[10,2], index: 7, kind: output, shape index: {}]  }
   0x1   :  { %v1251_v0 = vld [vmem:[%s1737_s0 + $0x38] sm:$0xff]  ;;  %1278 = vset.pattern.permute.xlu1 %v1280_v3  ;;  %1277 = vset.pattern.permute.xlu0 %v1280_v3  ;;  %v1250_v4 = vld [vmem:[%s1737_s0 + $0x30] sm:$0xff]  ;;  %v120_v7 = vld [vmem:[%s1738_s2 + $0x68] sm:$0xff]  ;;  %vm939_vm3 = vcmask 1041408   ;;  %vm935_vm4 = vcmask 687104   ;;  %vm957_vm5 = vcmask 15360  }
   0x2   :  { %v1259_v1 = vld [vmem:[%s1737_s0 + $0x78] sm:$0xff]  ;;  %1279 = vset.pattern.permute.xlu2 %v1280_v3  ;;  %518 = vmatpush.bf16.msra.mxu0 %v1251_v0  ;;  %v1258_v5 = vld [vmem:[%s1737_s0 + $0x70] sm:$0xff]  ;;  %v1249_v8 = vld [vmem:[%s1737_s0 + $0x28] sm:$0xff]  ;;  %vm959_vm6 = vcmask 9216  }
   0x3   :  { %v1267_v2 = vld [vmem:[%s1737_s0 + $0xb8] sm:$0xff]  ;;  %566 = vmatpush.bf16.msra.mxu1 %v1259_v1  ;;  %v1266_v6 = vld [vmem:[%s1737_s0 + $0xb0] sm:$0xff]  ;;  %189 = vperm.xlu1 %1278, %v120_v7   ;;  %v1257_v9 = vld [vmem:[%s1737_s0 + $0x68] sm:$0xff] }
   0x4   :  { %614 = vmatpush.bf16.msra.mxu2 %v1267_v2  ;;  %v1265_v10 = vld [vmem:[%s1737_s0 + $0xa8] sm:$0xff]  ;;  %v117_v11 = vld [vmem:[%s1738_s2 + $0x50] sm:$0xff]  ;;  %v1248_v12 = vld [vmem:[%s1737_s0 + $0x20] sm:$0xff] }
   0x5   :  { %v1256_v13 = vld [vmem:[%s1737_s0 + $0x60] sm:$0xff]  ;;  %v121_v15 = vld [vmem:[%s1738_s2 + $0x70] sm:$0xff]  ;;  %v118_v16 = vld [vmem:[%s1738_s2 + $0x58] sm:$0xff] }
   0x6   :  { %519 = vmatpush.bf16.msra.mxu0 %v1250_v4  ;;  %v1264_v14 = vld [vmem:[%s1737_s0 + $0xa0] sm:$0xff]  ;;  %194 = vperm.xlu0 %1277, %v121_v15   ;;  %v1247_v17 = vld [vmem:[%s1737_s0 + $0x18] sm:$0xff]  ;;  %v113_v20 = vld [vmem:[%s1738_s2 + $0x30] sm:$0xff] }
   0x7   :  { %567 = vmatpush.bf16.msra.mxu1 %v1258_v5  ;;  %179 = vperm.xlu2 %1279, %v118_v16   ;;  %v1255_v18 = vld [vmem:[%s1737_s0 + $0x58] sm:$0xff]  ;;  %v119_v21 = vld [vmem:[%s1738_s2 + $0x60] sm:$0xff]  ;;  %v1246_v22 = vld [vmem:[%s1737_s0 + $0x10] sm:$0xff] }
   0x8   :  { %615 = vmatpush.bf16.msra.mxu2 %v1266_v6  ;;  %v1263_v19 = vld [vmem:[%s1737_s0 + $0x98] sm:$0xff]  ;;  %v1254_v23 = vld [vmem:[%s1737_s0 + $0x50] sm:$0xff]  ;;  %v115_v24 = vld [vmem:[%s1738_s2 + $0x40] sm:$0xff] }
   0x9   :  { %v1262_v25 = vld [vmem:[%s1737_s0 + $0x90] sm:$0xff]  ;;  %v1268_v26 = vld [vmem:[%s1737_s0 + $0xc0] sm:$0xff]  ;;  %v1245_v27 = vld [vmem:[%s1737_s0 + $0x8] sm:$0xff] }
   0xa   :  { %520 = vmatpush.bf16.msra.mxu0 %v1249_v8  ;;  %1275 = vmatpush.bf16.msra.mxu3 %v1268_v26  ;;  %v1253_v28 = vld [vmem:[%s1737_s0 + $0x48] sm:$0xff]  ;;  %v1244_v30 = vld [vmem:[%s1737_s0] sm:$0xff]  ;;  %v1218_v33 = vld [vmem:[%s1739_s1 + $0xc] sm:$0xf0] }
   0xb   :  { %568 = vmatpush.bf16.msra.mxu1 %v1257_v9  ;;  %174 = vperm.xlu1 %1278, %v117_v11   ;;  %v1261_v29 = vld [vmem:[%s1737_s0 + $0x88] sm:$0xff]  ;;  %v1252_v31 = vld [vmem:[%s1737_s0 + $0x40] sm:$0xff]  ;;  %v969_v37 = vld [vmem:[%s1739_s1 + $0x10] sm:$0xf0] }
   0xc   :  { %616 = vmatpush.bf16.msra.mxu2 %v1265_v10  ;;  %v967_v32 = vld [vmem:[%s1739_s1] sm:$0xf]  ;;  %v112_v34 = vld [vmem:[%s1738_s2 + $0x28] sm:$0xff]  ;;  %v1216_v36 = vld [vmem:[%s1739_s1 + $0x4] sm:$0xf] }
   0xd   :  { %v116_v35 = vld [vmem:[%s1738_s2 + $0x48] sm:$0xff]  ;;  %v114_v38 = vld [vmem:[%s1738_s2 + $0x38] sm:$0xff]  ;;  %v1260_v39 = vld [vmem:[%s1737_s0 + $0x80] sm:$0xff]  ;;  %v968_v42 = vor.u32 %v1218_v33, %v967_v32  ;;  %v972_v43 = vor.u32 %v1216_v36, %v969_v37 }
   0xe   :  { %521 = vmatpush.bf16.msra.mxu0 %v1248_v12  ;;  %184 = vperm.xlu0 %1277, %v119_v21   ;;  %v975_v40 = vld [vmem:[%s1739_s1 + $0x8] sm:$0xf]  ;;  %v1219_v41 = vld [vmem:[%s1739_s1 + $0x14] sm:$0xf0]  ;;  %v1225_v45 = vld [vmem:[%s1739_s1 + $0x4c] sm:$0xf] }
   0xf   :  { %569 = vmatpush.bf16.msra.mxu1 %v1256_v13  ;;  %164 = vperm.xlu2 %1279, %v115_v24   ;;  %v976_v44 = vor.u32 %v1219_v41, %v975_v40  ;;  %v1009_v46 = vld [vmem:[%s1739_s1 + $0x58] sm:$0xf0]  ;;  %v107_v47 = vld [vmem:[%s1738_s2] sm:$0xff]  ;;  %v109_v50 = vld [vmem:[%s1738_s2 + $0x10] sm:$0xff] }
  0x10   :  { %617 = vmatpush.bf16.msra.mxu2 %v1264_v14  ;;  %v111_v48 = vld [vmem:[%s1738_s2 + $0x20] sm:$0xff]  ;;  %v1012_v49 = vor.u32 %v1225_v45, %v1009_v46  ;;  %v1222_v52 = vld [vmem:[%s1739_s1 + $0x2c] sm:$0xf0]  ;;  %v110_v53 = vld [vmem:[%s1738_s2 + $0x18] sm:$0xff] }
  0x11   :  { %v983_v51 = vld [vmem:[%s1739_s1 + $0x20] sm:$0xf]  ;;  %v1220_v54 = vld [vmem:[%s1739_s1 + $0x24] sm:$0xf]  ;;  %v985_v55 = vld [vmem:[%s1739_s1 + $0x30] sm:$0xf0] }
  0x12   :  { %522 = vmatpush.bf16.msra.mxu0 %v1247_v17  ;;  %1179 = vmatmul.msk.bf16.vlgmr.msra.gmra.mxu3 %vm493_vm0, %v1012_v49  ;;  %v108_v56 = vld [vmem:[%s1738_s2 + $0x8] sm:$0xff]  ;;  %v1223_v58 = vld [vmem:[%s1739_s1 + $0x34] sm:$0xf0]  ;;  %v984_v59 = vor.u32 %v1222_v52, %v983_v51  ;;  %v988_v60 = vor.u32 %v1220_v54, %v985_v55  ;;  %v1025_v63 = vld [vmem:[%s1739_s1 + $0x78] sm:$0xf0] }
  0x13   :  { %570 = vmatpush.bf16.msra.mxu1 %v1255_v18  ;;  %154 = vperm.xlu1 %1278, %v113_v20   ;;  %v991_v57 = vld [vmem:[%s1739_s1 + $0x28] sm:$0xf]  ;;  %v1229_v62 = vld [vmem:[%s1739_s1 + $0x6c] sm:$0xf]  ;;  %v999_v1 = vld [vmem:[%s1739_s1 + $0x40] sm:$0xf] }
  0x14   :  { %618 = vmatpush.bf16.msra.mxu2 %v1263_v19  ;;  %v992_v61 = vor.u32 %v1223_v58, %v991_v57  ;;  %v1028_v0 = vor.u32 %v1229_v62, %v1025_v63  ;;  %v1226_v2 = vld [vmem:[%s1739_s1 + $0x4c] sm:$0xf0]  ;;  %v1224_v3 = vld [vmem:[%s1739_s1 + $0x44] sm:$0xf]  ;;  %v1001_v4 = vld [vmem:[%s1739_s1 + $0x50] sm:$0xf0] }
  0x15   :  { %v1007_v5 = vld [vmem:[%s1739_s1 + $0x48] sm:$0xf]  ;;  %v1227_v6 = vld [vmem:[%s1739_s1 + $0x54] sm:$0xf0]  ;;  %v1000_v7 = vor.u32 %v1226_v2, %v999_v1  ;;  %v1004_v8 = vor.u32 %v1224_v3, %v1001_v4  ;;  %v1233_v10 = vld [vmem:[%s1739_s1 + $0x8c] sm:$0xf] }
  0x16   :  { %523 = vmatpush.bf16.msra.mxu0 %v1246_v22  ;;  %169 = vperm.xlu0 %1277, %v116_v35   ;;  %v1008_v9 = vor.u32 %v1227_v6, %v1007_v5  ;;  %v1041_v11 = vld [vmem:[%s1739_s1 + $0x98] sm:$0xf0]  ;;  %v1015_v13 = vld [vmem:[%s1739_s1 + $0x60] sm:$0xf]  ;;  %v1230_v14 = vld [vmem:[%s1739_s1 + $0x6c] sm:$0xf0] }
  0x17   :  { %571 = vmatpush.bf16.msra.mxu1 %v1254_v23  ;;  %159 = vperm.xlu2 %1279, %v114_v38   ;;  %v1044_v12 = vor.u32 %v1233_v10, %v1041_v11  ;;  %v1228_v15 = vld [vmem:[%s1739_s1 + $0x64] sm:$0xf]  ;;  %v1017_v16 = vld [vmem:[%s1739_s1 + $0x70] sm:$0xf0]  ;;  %v1023_v17 = vld [vmem:[%s1739_s1 + $0x68] sm:$0xf]  ;;  %v1016_v19 = vor.u32 %v1230_v14, %v1015_v13 }
  0x18   :  { %619 = vmatpush.bf16.msra.mxu2 %v1262_v25  ;;  %v1231_v18 = vld [vmem:[%s1739_s1 + $0x74] sm:$0xf0]  ;;  %v1020_v20 = vor.u32 %v1228_v15, %v1017_v16  ;;  %v1237_v22 = vld [vmem:[%s1739_s1 + $0xac] sm:$0xf]  ;;  %v1057_v23 = vld [vmem:[%s1739_s1 + $0xb8] sm:$0xf0] }
  0x19   :  { %v1024_v21 = vor.u32 %v1231_v18, %v1023_v17  ;;  %v1060_v24 = vor.u32 %v1237_v22, %v1057_v23  ;;  %v754_v25 = vld [vmem:[%s1740_s4 + $0x50] sm:$0xf]  ;;  %v1241_v35 = vld [vmem:[%s1739_s1 + $0xcc] sm:$0xf]  ;;  %v1073_v36 = vld [vmem:[%s1739_s1 + $0xd8] sm:$0xf0] }
  0x1a   :  { %524 = vmatpush.bf16.msra.mxu0 %v1245_v27  ;;  %v1234_v27 = vld [vmem:[%s1739_s1 + $0x8c] sm:$0xf0]  ;;  %v1076_v37 = vor.u32 %v1241_v35, %v1073_v36  ;;  %v749_v40 = vld [vmem:[%s1740_s4 + $0x28] sm:$0xff]  ;;  %v1047_v41 = vld [vmem:[%s1739_s1 + $0xa0] sm:$0xf] }
  0x1b   :  { %572 = vmatpush.bf16.msra.mxu1 %v1253_v28  ;;  %149 = vperm.xlu1 %1278, %v112_v34   ;;  %v1232_v28 = vld [vmem:[%s1739_s1 + $0x84] sm:$0xf]  ;;  %v750_v38 = vld [vmem:[%s1740_s4 + $0x30] sm:$0xff]  ;;  %v1055_v45 = vld [vmem:[%s1739_s1 + $0xa8] sm:$0xf] }
  0x1c   :  { %620 = vmatpush.bf16.msra.mxu2 %v1261_v29  ;;  %v1033_v29 = vld [vmem:[%s1739_s1 + $0x90] sm:$0xf0]  ;;  %v1239_v46 = vld [vmem:[%s1739_s1 + $0xb4] sm:$0xf0]  ;;  %v56_v49 = vld [vmem:[%s1739_s1 + $0xe8] sm:$0xff] }
  0x1d   :  { %v1036_v33 = vor.u32 %v1232_v28, %v1033_v29  ;;  %v286_v51 = vunpack.c.h.b16 %v56_v49  ;;  %v744_v54 = vld [vmem:[%s1740_s4] sm:$0xff]  ;;  %v919_v58 = vld [vmem:[%s1741_s6 + $0x8] sm:$0x3]  ;;  %v1243_v63 = vld [vmem:[%s1739_s1 + $0xd4] sm:$0xf0]  ;;  %v285_v13 = vunpack.c.l.b16 %v56_v49 }
  0x1e   :  { %525 = vmatpush.bf16.msra.mxu0 %v1244_v30  ;;  %144 = vperm.xlu0 %1277, %v111_v48   ;;  %v1039_v30 = vld [vmem:[%s1739_s1 + $0x88] sm:$0xf]  ;;  %v1063_v57 = vld [vmem:[%s1739_s1 + $0xc0] sm:$0xf] }
  0x1f   :  { %573 = vmatpush.bf16.msra.mxu1 %v1252_v31  ;;  %134 = vperm.xlu2 %1279, %v109_v50   ;;  %v1235_v31 = vld [vmem:[%s1739_s1 + $0x94] sm:$0xf0]  ;;  %v1056_v50 = vor.u32 %v1239_v46, %v1055_v45  ;;  %v318_v52 = vpack.c.b16 %v286_v51, %v286_v51  ;;  %v1071_v62 = vld [vmem:[%s1739_s1 + $0xc8] sm:$0xf]  ;;  %v317_v17 = vpack.c.b16 %v285_v13, %v285_v13  ;;  %v918_v22 = vld [vmem:[%s1741_s6] sm:$0xff] }
  0x20   :  { %621 = vmatpush.bf16.msra.mxu2 %v1260_v39  ;;  %v1040_v34 = vor.u32 %v1235_v31, %v1039_v30  ;;  %v752_v39 = vld [vmem:[%s1740_s4 + $0x40] sm:$0xff]  ;;  %v1072_v3 = vor.u32 %v1243_v63, %v1071_v62  ;;  %v753_v5 = vld [vmem:[%s1740_s4 + $0x48] sm:$0xff] }
  0x21   :  { %526 = vmatmul.bf16.vlgmr.msra.gmra.mxu0 %v968_v42  ;;  %v1238_v42 = vld [vmem:[%s1739_s1 + $0xac] sm:$0xf0]  ;;  %v745_v6 = vld [vmem:[%s1740_s4 + $0x8] sm:$0xff] }
  0x22   :  { %574 = vmatmul.bf16.vlgmr.msra.gmra.mxu1 %v972_v43  ;;  %1180 = vmatmul.msk.bf16.gmra.mxu3 %vm493_vm0, %v1028_v0  ;;  %v1236_v43 = vld [vmem:[%s1739_s1 + $0xa4] sm:$0xf] }
  0x23   :  { %669 = vmatpush.bf16.msrb.mxu1 %v1268_v26  ;;  %622 = vmatmul.bf16.vlgmr.msra.gmra.mxu2 %v976_v44  ;;  %v1031_v26 = vld [vmem:[%s1739_s1 + $0x80] sm:$0xf]  ;;  %v1049_v44 = vld [vmem:[%s1739_s1 + $0xb0] sm:$0xf0] }
  0x24   :  { %124 = vperm.xlu1 %1278, %v107_v47   ;;  %v1032_v32 = vor.u32 %v1234_v27, %v1031_v26  ;;  %v1048_v47 = vor.u32 %v1238_v42, %v1047_v41  ;;  %v1052_v48 = vor.u32 %v1236_v43, %v1049_v44  ;;  %v1221_v42 = vld [vmem:[%s1739_s1 + $0x2c] sm:$0xf]  ;;  %v993_v43 = vld [vmem:[%s1739_s1 + $0x38] sm:$0xf0] }
  0x25   :  { %v996_v45 = vor.u32 %v1221_v42, %v993_v43 }
  0x26   :  { %139 = vperm.xlu0 %1277, %v110_v53   ;;  %v751_v53 = vld [vmem:[%s1740_s4 + $0x38] sm:$0xff] }
  0x27   :  { %129 = vperm.xlu2 %1279, %v108_v56   ;;  %v746_v56 = vld [vmem:[%s1740_s4 + $0x10] sm:$0xff] }
  0x2c   :  { %797 = vperm.xlu1 %1278, %v752_v39  }
  0x2e   :  { %807 = vperm.xlu0 %1277, %v754_v25   ;;  %v977_v25 = vld [vmem:[%s1739_s1 + $0x18] sm:$0xf0] }
  0x2f   :  { %802 = vperm.xlu2 %1279, %v753_v5  }
  0x31   :  { %531 = vmatmul.bf16.gmra.mxu0 %v984_v59  ;;  %v1242_v59 = vld [vmem:[%s1739_s1 + $0xcc] sm:$0xf0] }
  0x32   :  { %579 = vmatmul.bf16.gmra.mxu1 %v988_v60  ;;  %1181 = vmatmul.msk.bf16.gmra.mxu3 %vm493_vm0, %v1044_v12  ;;  %v1240_v60 = vld [vmem:[%s1739_s1 + $0xc4] sm:$0xf]  ;;  %v1064_v1 = vor.u32 %v1242_v59, %v1063_v57 }
  0x33   :  { %627 = vmatmul.bf16.gmra.mxu2 %v992_v61  ;;  %v1065_v61 = vld [vmem:[%s1739_s1 + $0xd0] sm:$0xf0]  ;;  %v748_v12 = vld [vmem:[%s1740_s4 + $0x20] sm:$0xff] }
  0x34   :  { %792 = vperm.xlu1 %1278, %v751_v53   ;;  %v1068_v2 = vor.u32 %v1240_v60, %v1065_v61 }
  0x36   :  { %787 = vperm.xlu0 %1277, %v750_v38  }
  0x37   :  { %777 = vperm.xlu2 %1279, %v748_v12  }
  0x3c   :  { %767 = vperm.xlu1 %1278, %v746_v56  }
  0x3e   :  { %782 = vperm.xlu0 %1277, %v749_v40  }
  0x41   :  { %536 = vmatmul.bf16.gmra.mxu0 %v1000_v7 }
  0x42   :  { %584 = vmatmul.bf16.gmra.mxu1 %v1004_v8  ;;  %1182 = vmatmul.msk.bf16.gmra.mxu3 %vm493_vm0, %v1060_v24  ;;  %v55_v8 = vld [vmem:[%s1739_s1 + $0xe0] sm:$0xff]  ;;  %v1217_v24 = vld [vmem:[%s1739_s1 + $0xc] sm:$0xf] }
  0x43   :  { %632 = vmatmul.bf16.gmra.mxu2 %v1008_v9  ;;  %v283_v10 = vunpack.c.l.b16 %v55_v8  ;;  %v284_v11 = vunpack.c.h.b16 %v55_v8  ;;  %v980_v27 = vor.u32 %v1217_v24, %v977_v25 }
  0x44   :  { %762 = vperm.xlu1 %1278, %v745_v6  }
  0x45   :  { %v315_v15 = vpack.c.b16 %v283_v10, %v283_v10  ;;  %v316_v16 = vpack.c.b16 %v284_v11, %v284_v11 }
  0x46   :  { %757 = vperm.xlu0 %1277, %v744_v54  }
  0x4e   :  { %927 = vperm.xlu0 %1277, %v919_v58  }
  0x51   :  { %541 = vmatmul.bf16.gmra.mxu0 %v1016_v19  ;;  %v747_v19 = vld [vmem:[%s1740_s4 + $0x18] sm:$0xff] }
  0x52   :  { %589 = vmatmul.bf16.gmra.mxu1 %v1020_v20  ;;  %1183 = vmatmul.msk.bf16.gmra.mxu3 %vm493_vm0, %v1076_v37 }
  0x53   :  { %637 = vmatmul.bf16.gmra.mxu2 %v1024_v21  ;;  %772 = vperm.xlu2 %1279, %v747_v19  }
  0x5b   :  { %922 = vperm.xlu2 %1279, %v918_v22  }
  0x61   :  { %546 = vmatmul.bf16.gmra.mxu0 %v1032_v32  ;;  %v1632_v0 = vpop.permute.xlu2 %179 }
  0x62   :  { %594 = vmatmul.bf16.gmra.mxu1 %v1036_v33  ;;  %1184 = vmatmul.msk.bf16.gmra.mxu3 %vm493_vm0, %v318_v52 }
  0x63   :  { %642 = vmatmul.bf16.gmra.mxu2 %v1040_v34 }
  0x69   :  { %v1642_v7 = vpop.permute.xlu2 %164 }
  0x71   :  { %551 = vmatmul.bf16.gmra.mxu0 %v1048_v47  ;;  %v1654_v18 = vpop.permute.xlu2 %159 }
  0x72   :  { %599 = vmatmul.bf16.gmra.mxu1 %v1052_v48 }
  0x73   :  { %647 = vmatmul.bf16.gmra.mxu2 %v1056_v50 }
  0x75   :  { %v1606_v55 = vpop.permute.xlu1 %189 }
  0x78   :  { %v1652_v14 = vpop.permute.xlu0 %194 }
  0x79   :  { %v135_v23 = vpop.permute.xlu2 %134 }
  0x7d   :  { %v1634_v4 = vpop.permute.xlu1 %174 }
  0x80   :  { %v1659_v21 = vpop.permute.xlu0 %184 }
  0x81   :  { %556 = vmatmul.bf16.gmra.mxu0 %v1064_v1  ;;  %v130_v33 = vpop.permute.xlu2 %129 }
  0x82   :  { %604 = vmatmul.bf16.gmra.mxu1 %v1068_v2 }
  0x83   :  { %652 = vmatmul.bf16.gmra.mxu2 %v1072_v3 }
  0x85   :  { %v1647_v9 = vpop.permute.xlu1 %154 }
  0x88   :  { %v1670_v31 = vpop.permute.xlu0 %169 }
  0x8d   :  { %v150_v20 = vpop.permute.xlu1 %149 }
  0x90   :  { %v145_v41 = vpop.permute.xlu0 %144 }
  0x91   :  { %561 = vmatmul.bf16.gmra.mxu0 %v315_v15 }
  0x92   :  { %609 = vmatmul.bf16.gmra.mxu1 %v316_v16 }
  0x93   :  { %657 = vmatmul.bf16.gmra.mxu2 %v317_v17 }
  0x95   :  { %v681_v39 = vpop.f32.mrf.mxu3 }
  0x96   :  { %v125_v26 = vpop.permute.xlu1 %124 }
  0x98   :  { %v140_v52 = vpop.permute.xlu0 %139 }
  0x9d   :  { %v683_v50 = vpop.f32.mrf.mxu3 }
  0x9e   :  { %v527_v28 = vpop.f32.mrf.mxu0 }
  0x9f   :  { %v575_v29 = vpop.f32.mrf.mxu1  ;;  %v528_v30 = vadd.f32 %v527_v28, %v125_v26 }
  0xa1   :  { %v576_v32 = vadd.f32 %v575_v29, %v528_v30 }
  0xa2   :  { %1177 = vmatmul.msk.bf16.vlgmr.msrb.gmra.mxu1 %vm493_vm0, %v980_v27 }
  0xa5   :  { %v686_v59 = vpop.f32.mrf.mxu3 }
  0xa6   :  { %v623_v34 = vpop.f32.mrf.mxu2  ;;  %v529_v36 = vpop.f32.mrf.mxu0 }
  0xa7   :  { %v1673_v35 = vadd.f32 %v623_v34, %v576_v32  ;;  %v577_v37 = vpop.f32.mrf.mxu1  ;;  %v530_v38 = vadd.f32 %v529_v36, %v130_v33 }
  0xa9   :  { %v578_v40 = vadd.f32 %v577_v37, %v530_v38 }
  0xad   :  { %v688_v3 = vpop.f32.mrf.mxu3 }
  0xae   :  { %v625_v44 = vpop.f32.mrf.mxu2  ;;  %v532_v47 = vpop.f32.mrf.mxu0 }
  0xaf   :  { %v1681_v46 = vadd.f32 %v625_v44, %v578_v40  ;;  %v580_v48 = vpop.f32.mrf.mxu1  ;;  %v533_v49 = vadd.f32 %v532_v47, %v135_v23 }
  0xb1   :  { %v581_v51 = vadd.f32 %v580_v48, %v533_v49 }
  0xb2   :  { %1178 = vmatmul.msk.bf16.gmra.mxu1 %vm493_vm0, %v996_v45 }
  0xb5   :  { %v691_v13 = vpop.f32.mrf.mxu3 }
  0xb6   :  { %v628_v53 = vpop.f32.mrf.mxu2  ;;  %v534_v56 = vpop.f32.mrf.mxu0 }
  0xb7   :  { %v1684_v54 = vadd.f32 %v628_v53, %v581_v51  ;;  %v582_v57 = vpop.f32.mrf.mxu1  ;;  %v535_v58 = vadd.f32 %v534_v56, %v140_v52 }
  0xb9   :  { %v583_v60 = vadd.f32 %v582_v57, %v535_v58 }
  0xbd   :  { %v693_v25 = vpop.f32.mrf.mxu3 }
  0xbe   :  { %v630_v61 = vpop.f32.mrf.mxu2  ;;  %v537_v63 = vpop.f32.mrf.mxu0 }
  0xbf   :  { %v1686_v62 = vadd.f32 %v630_v61, %v583_v60  ;;  %v585_v1 = vpop.f32.mrf.mxu1  ;;  %v538_v2 = vadd.f32 %v537_v63, %v145_v41 }
  0xc1   :  { %v586_v5 = vadd.f32 %v585_v1, %v538_v2 }
  0xc5   :  { %v696_v37 = vpop.f32.mrf.mxu3 }
  0xc6   :  { %v633_v6 = vpop.f32.mrf.mxu2  ;;  %v539_v10 = vpop.f32.mrf.mxu0 }
  0xc7   :  { %v634_v8 = vadd.f32 %v633_v6, %v586_v5  ;;  %v587_v11 = vpop.f32.mrf.mxu1  ;;  %v540_v12 = vadd.f32 %v539_v10, %v150_v20 }
  0xc9   :  { %v682_v15 = vadd.f32 %v681_v39, %v634_v8  ;;  %v588_v16 = vadd.f32 %v587_v11, %v540_v12 }
  0xcb   :  { %v714_v28 = vmax.f32 %v682_v15, 0.0 }
  0xcd   :  { %v698_v44 = vpop.f32.mrf.mxu3 }
  0xce   :  { %v635_v17 = vpop.f32.mrf.mxu2  ;;  %v542_v22 = vpop.f32.mrf.mxu0 }
  0xcf   :  { %v636_v19 = vadd.f32 %v635_v17, %v588_v16  ;;  %v590_v23 = vpop.f32.mrf.mxu1  ;;  %v543_v24 = vadd.f32 %v542_v22, %v1647_v9 }
  0xd1   :  { %v684_v26 = vadd.f32 %v683_v50, %v636_v19  ;;  %v591_v27 = vadd.f32 %v590_v23, %v543_v24 }
  0xd3   :  { %v715_v29 = vmax.f32 %v684_v26, 0.0 }
  0xd5   :  { %v1689_v30 = vpack.c.bf16 %v715_v29, %v714_v28  ;;  %v701_v56 = vpop.f32.mrf.mxu3 }
  0xd6   :  { %v638_v32 = vpop.f32.mrf.mxu2  ;;  %v544_v34 = vpop.f32.mrf.mxu0 }
  0xd7   :  { %v639_v33 = vadd.f32 %v638_v32, %v591_v27  ;;  %v592_v20 = vpop.f32.mrf.mxu1  ;;  %v545_v36 = vadd.f32 %v544_v34, %v1654_v18 }
  0xd9   :  { %v687_v38 = vadd.f32 %v686_v59, %v639_v33  ;;  %v593_v39 = vadd.f32 %v592_v20, %v545_v36 }
  0xdb   :  { %v716_v48 = vmax.f32 %v687_v38, 0.0 }
  0xdd   :  { %v703_v1 = vpop.f32.mrf.mxu3 }
  0xde   :  { %v640_v40 = vpop.f32.mrf.mxu2  ;;  %v547_v42 = vpop.f32.mrf.mxu0 }
  0xdf   :  { %v641_v41 = vadd.f32 %v640_v40, %v593_v39  ;;  %v595_v9 = vpop.f32.mrf.mxu1  ;;  %v548_v43 = vadd.f32 %v547_v42, %v1642_v7 }
  0xe1   :  { %v689_v45 = vadd.f32 %v688_v3, %v641_v41  ;;  %v596_v47 = vadd.f32 %v595_v9, %v548_v43 }
  0xe3   :  { %v717_v49 = vmax.f32 %v689_v45, 0.0 }
  0xe5   :  { %v1693_v50 = vpack.c.bf16 %v717_v49, %v716_v48  ;;  %v706_v15 = vpop.f32.mrf.mxu3 }
  0xe6   :  { %v643_v51 = vpop.f32.mrf.mxu2  ;;  %v549_v53 = vpop.f32.mrf.mxu0 }
  0xe7   :  { %v644_v52 = vadd.f32 %v643_v51, %v596_v47  ;;  %v597_v18 = vpop.f32.mrf.mxu1  ;;  %v550_v58 = vadd.f32 %v549_v53, %v1670_v31 }
  0xe9   :  { %v692_v57 = vadd.f32 %v691_v13, %v644_v52  ;;  %v598_v59 = vadd.f32 %v597_v18, %v550_v58 }
  0xeb   :  { %v718_v3 = vmax.f32 %v692_v57, 0.0 }
  0xee   :  { %v645_v60 = vpop.f32.mrf.mxu2  ;;  %v552_v63 = vpop.f32.mrf.mxu0 }
  0xef   :  { %v646_v61 = vadd.f32 %v645_v60, %v598_v59  ;;  %v600_v7 = vpop.f32.mrf.mxu1  ;;  %v553_v6 = vadd.f32 %v552_v63, %v1634_v4 }
  0xf1   :  { %v694_v2 = vadd.f32 %v693_v25, %v646_v61  ;;  %v601_v16 = vadd.f32 %v600_v7, %v553_v6  ;;  %v708_v25 = vpop.f32.mrf.mxu3 }
  0xf3   :  { %v719_v5 = vmax.f32 %v694_v2, 0.0 }
  0xf5   :  { %v740_v8 = vpack.c.bf16 %v719_v5, %v718_v3 }
  0xf6   :  { %v648_v10 = vpop.f32.mrf.mxu2  ;;  %v554_v11 = vpop.f32.mrf.mxu0 }
  0xf7   :  { %v602_v12 = vpop.f32.mrf.mxu1  ;;  %v555_v13 = vadd.f32 %v554_v11, %v1632_v0  ;;  %v649_v31 = vadd.f32 %v648_v10, %v601_v16  ;;  %v808_v16 = vpop.permute.xlu0 %807 }
  0xf9   :  { %v603_v17 = vadd.f32 %v602_v12, %v555_v13  ;;  %v697_v22 = vadd.f32 %v696_v37, %v649_v31  ;;  %v798_v13 = vpop.permute.xlu1 %797 }
  0xfb   :  { %v720_v28 = vmax.f32 %v697_v22, 0.0 }
  0xfe   :  { %v650_v19 = vpop.f32.mrf.mxu2  ;;  %v557_v24 = vpop.f32.mrf.mxu0 }
  0xff   :  { %v651_v23 = vadd.f32 %v650_v19, %v603_v17  ;;  %v605_v26 = vpop.f32.mrf.mxu1  ;;  %v558_v37 = vadd.f32 %v557_v24, %v1659_v21  ;;  %v788_v31 = vpop.permute.xlu0 %787 }
 0x100   :  { %v803_v24 = vpop.permute.xlu2 %802 }
 0x101   :  { %v699_v27 = vadd.f32 %v698_v44, %v651_v23  ;;  %v606_v42 = vadd.f32 %v605_v26, %v558_v37  ;;  %v793_v17 = vpop.permute.xlu1 %792 }
 0x103   :  { %v721_v29 = vmax.f32 %v699_v27, 0.0 }
 0x105   :  { %v741_v4 = vpack.c.bf16 %v721_v29, %v720_v28 }
 0x106   :  { %v653_v32 = vpop.f32.mrf.mxu2  ;;  %v559_v33 = vpop.f32.mrf.mxu0 }
 0x107   :  { %v607_v34 = vpop.f32.mrf.mxu1  ;;  %v560_v0 = vadd.f32 %v559_v33, %v1606_v55  ;;  %v654_v48 = vadd.f32 %v653_v32, %v606_v42  ;;  %v783_v19 = vpop.permute.xlu0 %782 }
 0x109   :  { %v608_v40 = vadd.f32 %v607_v34, %v560_v0  ;;  %v702_v53 = vadd.f32 %v701_v56, %v654_v48  ;;  %v768_v22 = vpop.permute.xlu1 %767  ;;  %v778_v34 = vpop.permute.xlu2 %777 }
 0x10b   :  { %v722_v21 = vmax.f32 %v702_v53, 0.0 }
 0x10e   :  { %v655_v20 = vpop.f32.mrf.mxu2  ;;  %v562_v36 = vpop.f32.mrf.mxu0 }
 0x10f   :  { %v610_v38 = vpop.f32.mrf.mxu1  ;;  %v563_v39 = vadd.f32 %v562_v36, %v1652_v14  ;;  %v656_v9 = vadd.f32 %v655_v20, %v608_v40  ;;  %v758_v26 = vpop.permute.xlu0 %757 }
 0x111   :  { %v611_v41 = vadd.f32 %v610_v38, %v563_v39  ;;  %v704_v51 = vadd.f32 %v703_v1, %v656_v9  ;;  %v763_v27 = vpop.permute.xlu1 %762  ;;  %v773_v38 = vpop.permute.xlu2 %772 }
 0x113   :  { %v723_v55 = vmax.f32 %v704_v51, 0.0 }
 0x115   :  { %v742_v59 = vpack.c.bf16 %v723_v55, %v722_v21 }
 0x116   :  { %v658_v43 = vpop.f32.mrf.mxu2  ;;  %v564_v47 = vpop.f32.mrf.mxu0 }
 0x117   :  { %v659_v44 = vadd.f32 %v658_v43, %v611_v41  ;;  %v612_v45 = vpop.f32.mrf.mxu1 }
 0x119   :  { %v707_v49 = vadd.f32 %v706_v15, %v659_v44 }
 0x11b   :  { %v724_v52 = vmax.f32 %v707_v49, 0.0 }
 0x11d   :  { %v743_v18 = vpack.c.bf16 %v724_v52, %v724_v52 }
 0x11e   :  { %v660_v57 = vpop.f32.mrf.mxu2 }
 0x11f   :  { %v671_v14 = vpop.f32.mrf.mxu1  ;;  %v859_v58 = vsel %vm857_vm1, %v743_v18, 0 }
 0x120   :  { %861 = vmatpush.bf16.msrb.mxu3 %v859_v58  ;;  %v672_v60 = vadd.f32 %v671_v14, %v1673_v35 }
 0x122   :  { %v710_v7 = vmax.f32 %v672_v60, 0.0 }
 0x124   :  { %862 = vmatpush.bf16.msrb.mxu3 %v742_v59 }
 0x127   :  { %v673_v61 = vpop.f32.mrf.mxu1 }
 0x128   :  { %v674_v63 = vadd.f32 %v673_v61, %v1681_v46  ;;  %863 = vmatpush.bf16.msrb.mxu3 %v741_v4  ;;  %v1269_v46 = vld [vmem:[%s1742_s3] sm:$0xff] }
 0x12a   :  { %v711_v1 = vmax.f32 %v674_v63, 0.0 }
 0x12c   :  { %864 = vmatpush.bf16.msrb.mxu3 %v740_v8  ;;  %v736_v56 = vpack.c.bf16 %v711_v1, %v710_v7  ;;  %v735_v8 = vld [vmem:[%s1742_s3 + $0x28] sm:$0x3] }
 0x12d   :  { %v831_v12 = vunpack.c.l.b16 %v735_v8 }
 0x12f   :  { %v676_v2 = vpop.f32.mrf.mxu1  ;;  %v837_v15 = vpack.c.b16 %v831_v12, %v831_v12 }
 0x130   :  { %865 = vmatpush.bf16.msrb.mxu3 %v1693_v50  ;;  %v677_v3 = vadd.f32 %v676_v2, %v1684_v54  ;;  %v1271_v54 = vld [vmem:[%s1742_s3 + $0x10] sm:$0xff]  ;;  %v1273_v50 = vld [vmem:[%s1742_s3 + $0x20] sm:$0xff] }
 0x132   :  { %v712_v10 = vmax.f32 %v677_v3, 0.0 }
 0x134   :  { %866 = vmatpush.bf16.msrb.mxu3 %v1689_v30  ;;  %v1270_v30 = vld [vmem:[%s1742_s3 + $0x8] sm:$0xff] }
 0x137   :  { %v678_v5 = vpop.f32.mrf.mxu1 }
 0x138   :  { %v679_v6 = vadd.f32 %v678_v5, %v1686_v62  ;;  %v1272_v62 = vld [vmem:[%s1742_s3 + $0x18] sm:$0xff] }
 0x13a   :  { %v713_v35 = vmax.f32 %v679_v6, 0.0  ;;  %v1213_v6 = vld [vmem:[%s1743_s5] sm:$0xf] }
 0x13c   :  { %v737_v11 = vpack.c.bf16 %v713_v35, %v712_v10  ;;  %v1274_v10 = vld [vmem:[%s1743_s5] sm:$0x10] }
 0x13d   :  { %v1214_v35 = vor.u32 %v1274_v10, %v1213_v6 }
 0x13e   :  { %867 = vmatpush.bf16.msrb.mxu3 %v737_v11  ;;  %v923_v11 = vpop.permute.xlu2 %922 }
 0x142   :  { %868 = vmatpush.bf16.msrb.mxu3 %v736_v56 }
 0x145   :  { %1205 = vmatmul.msk.bf16.vlgmr.msrb.gmra.mxu3 %vm838_vm2, %v1269_v46 }
 0x155   :  { %1206 = vmatmul.msk.bf16.gmra.mxu3 %vm838_vm2, %v1270_v30 }
 0x165   :  { %1207 = vmatmul.msk.bf16.gmra.mxu3 %vm838_vm2, %v1271_v54  ;;  %v928_v54 = vpop.permute.xlu0 %927 }
 0x175   :  { %1208 = vmatmul.msk.bf16.gmra.mxu3 %vm838_vm2, %v1272_v62 }
 0x185   :  { %1209 = vmatmul.msk.bf16.gmra.mxu3 %vm838_vm2, %v1273_v50 }
 0x195   :  { %1210 = vmatmul.msk.bf16.gmra.mxu3 %vm838_vm2, %v837_v15 }
 0x1c8   :  { %v870_v23 = vpop.f32.mrf.mxu3 }
 0x1c9   :  { %v871_v25 = vadd.f32 %v870_v23, %v758_v26 }
 0x1cb   :  { %v899_v4 = vmax.f32 %v871_v25, 0.0 }
 0x1d0   :  { %v872_v28 = vpop.f32.mrf.mxu3 }
 0x1d1   :  { %v873_v29 = vadd.f32 %v872_v28, %v763_v27 }
 0x1d3   :  { %v900_v32 = vmax.f32 %v873_v29, 0.0 }
 0x1d5   :  { %v912_v33 = vpack.c.bf16 %v900_v32, %v899_v4 }
 0x1d8   :  { %v875_v20 = vpop.f32.mrf.mxu3 }
 0x1d9   :  { %v876_v36 = vadd.f32 %v875_v20, %v768_v22 }
 0x1db   :  { %v901_v37 = vmax.f32 %v876_v36, 0.0 }
 0x1e0   :  { %v877_v0 = vpop.f32.mrf.mxu3 }
 0x1e1   :  { %v878_v39 = vadd.f32 %v877_v0, %v773_v38 }
 0x1e3   :  { %v902_v40 = vmax.f32 %v878_v39, 0.0 }
 0x1e5   :  { %v913_v41 = vpack.c.bf16 %v902_v40, %v901_v37 }
 0x1e8   :  { %v880_v42 = vpop.f32.mrf.mxu3 }
 0x1e9   :  { %v881_v7 = vadd.f32 %v880_v42, %v778_v34 }
 0x1eb   :  { %v903_v3 = vmax.f32 %v881_v7, 0.0 }
 0x1f0   :  { %v882_v9 = vpop.f32.mrf.mxu3 }
 0x1f1   :  { %v883_v60 = vadd.f32 %v882_v9, %v783_v19 }
 0x1f3   :  { %v904_v56 = vmax.f32 %v883_v60, 0.0 }
 0x1f5   :  { %v914_v5 = vpack.c.bf16 %v904_v56, %v903_v3 }
 0x1f8   :  { %v885_v43 = vpop.f32.mrf.mxu3 }
 0x1f9   :  { %v886_v58 = vadd.f32 %v885_v43, %v788_v31 }
 0x1fb   :  { %v905_v1 = vmax.f32 %v886_v58, 0.0 }
 0x200   :  { %v887_v44 = vpop.f32.mrf.mxu3 }
 0x201   :  { %v888_v55 = vadd.f32 %v887_v44, %v793_v17 }
 0x203   :  { %v906_v61 = vmax.f32 %v888_v55, 0.0 }
 0x205   :  { %v915_v2 = vpack.c.bf16 %v906_v61, %v905_v1 }
 0x208   :  { %v890_v45 = vpop.f32.mrf.mxu3 }
 0x209   :  { %v891_v53 = vadd.f32 %v890_v45, %v798_v13 }
 0x20b   :  { %v907_v21 = vmax.f32 %v891_v53, 0.0 }
 0x210   :  { %v892_v47 = vpop.f32.mrf.mxu3 }
 0x211   :  { %v893_v51 = vadd.f32 %v892_v47, %v803_v24 }
 0x213   :  { %v908_v57 = vmax.f32 %v893_v51, 0.0 }
 0x215   :  { %v916_v63 = vpack.c.bf16 %v908_v57, %v907_v21 }
 0x218   :  { %v895_v48 = vpop.f32.mrf.mxu3 }
 0x219   :  { %v896_v49 = vadd.f32 %v895_v48, %v808_v16 }
 0x21b   :  { %v909_v52 = vmax.f32 %v896_v49, 0.0 }
 0x21d   :  { %v917_v18 = vpack.c.bf16 %v909_v52, %v909_v52 }
 0x21f   :  { %v941_v14 = vsel %vm939_vm3, %v917_v18, 0 }
 0x220   :  { %v897_v59 = vpop.f32.mrf.mxu3  ;;  %945 = vmatpush.bf16.msrb.mxu0 %v941_v14 }
 0x224   :  { %946 = vmatpush.bf16.msrb.mxu0 %v916_v63 }
 0x228   :  { %947 = vmatpush.bf16.msrb.mxu0 %v915_v2 }
 0x22c   :  { %948 = vmatpush.bf16.msrb.mxu0 %v914_v5 }
 0x230   :  { %949 = vmatpush.bf16.msrb.mxu0 %v913_v41 }
 0x234   :  { %950 = vmatpush.bf16.msrb.mxu0 %v912_v33 }
 0x237   :  { %1215 = vmatmul.msk.bf16.vlgmr.msrb.gmra.mxu0 %vm935_vm4, %v1214_v35 }
 0x2b4   :  { %v952_v46 = vpop.f32.mrf.mxu0 }
 0x2b5   :  { %v953_v30 = vadd.f32 %v952_v46, %v923_v11 }
 0x2b7   :  { %958 = vst.msk [vmem:[%s1744_s7] sm:$0xff] %vm957_vm5, %v953_v30 }
 0x2bc   :  { %v954_v62 = vpop.f32.mrf.mxu0 }
 0x2bd   :  { %v955_v50 = vadd.f32 %v954_v62, %v928_v54 }
 0x2bf   :  { %960 = vst.msk [vmem:[%s1744_s7 + $0x8] sm:$0x3] %vm959_vm6, %v955_v50 }

</bundles_post_ra>
